<compile_context>
chip_gen: v7x
topology: tpu7x:2x2x1
jax: 0.10.0
libtpu: 0.0.40
codegen_flags: <defaults>
</compile_context>

<pallas_src>
import math

import jax
import jax.numpy as jnp
from jax.experimental import pallas as pl
from jax.experimental.pallas import tpu as pltpu

EPS = 1e-5  # PyTorch LayerNorm default eps


# ----------------------------- kernel helpers -----------------------------

def _layernorm(x, g, b):
    # x: (R, D), g/b: (1, D)
    mean = jnp.mean(x, axis=-1, keepdims=True)
    var = jnp.mean(jnp.square(x - mean), axis=-1, keepdims=True)
    inv = jax.lax.rsqrt(var + EPS)
    return (x - mean) * inv * g + b


def _softmax_lastdim(scores):
    # Numerically stable softmax; divide moved to the EUP via approx reciprocal.
    scores = scores - jnp.max(scores, axis=-1, keepdims=True)
    p = jnp.exp(scores)
    denom = jnp.sum(p, axis=-1, keepdims=True)
    return p * pl.reciprocal(denom, approx=True)


def _make_kernel(bk, s, sm, f):
    r = bk * s  # total query rows = B*K*S

    def kernel(x_ref, m_ref, mT_ref,
               ln1g_ref, ln1b_ref,
               sa_wqk_ref, sa_bqk_ref, sa_wvo_ref, sa_bvo_ref,
               ln2g_ref, ln2b_ref,
               ca_wqk_ref, ca_bqk_ref, ca_wvo_ref, ca_bvo_ref,
               ln3g_ref, ln3b_ref,
               w1_ref, b1_ref, lnfg_ref, lnfb_ref, w2_ref, b2_ref,
               out_ref):
        f32 = jnp.float32
        x2 = x_ref[...]     # (R, F)       flat query rows
        m3 = m_ref[...]     # (BK, Sm, F)  memory, unprojected
        mT = mT_ref[...]    # (BK, F, Sm)  pre-transposed copy for the score matmul

        # ---- x = layernorm1(x); x = x + self_att(x, x, x) -------------------
        # Q/K folded into one (F,F) matmul; b_k dropped (softmax-invariant);
        # V projection dropped and Wv·Wo / bv·Wo+bo folded into one epilogue.
        x2 = _layernorm(x2, ln1g_ref[...], ln1b_ref[...])
        x3d = x2.reshape(bk, s, f)
        qk = jnp.dot(x2, sa_wqk_ref[...], preferred_element_type=f32) + sa_bqk_ref[...]
        attn = _softmax_lastdim(
            jnp.einsum("bqf,bkf->bqk", qk.reshape(bk, s, f), x3d,
                       preferred_element_type=f32))
        ctx = jnp.einsum("bqk,bkf->bqf", attn, x3d,
                         preferred_element_type=f32).reshape(r, f)
        x2 = x2 + jnp.dot(ctx, sa_wvo_ref[...], preferred_element_type=f32) + sa_bvo_ref[...]

        # ---- x = layernorm2(x); x = x + att(x, m, m) -------------------------
        # Same folds; m is never projected row-by-row, and the score matmul
        # uses the pre-transposed copy (no per-batch XLU transpose).
        x2 = _layernorm(x2, ln2g_ref[...], ln2b_ref[...])
        qk = jnp.dot(x2, ca_wqk_ref[...], preferred_element_type=f32) + ca_bqk_ref[...]
        attn = _softmax_lastdim(
            jnp.einsum("bqf,bfk->bqk", qk.reshape(bk, s, f), mT,
                       preferred_element_type=f32))
        ctx = jnp.einsum("bqk,bkf->bqf", attn, m3,
                         preferred_element_type=f32).reshape(r, f)
        x2 = x2 + jnp.dot(ctx, ca_wvo_ref[...], preferred_element_type=f32) + ca_bvo_ref[...]

        # ---- x = layernorm3(x); x = x + feed(x) -------------------------------
        x2 = _layernorm(x2, ln3g_ref[...], ln3b_ref[...])
        h = jnp.dot(x2, w1_ref[...], preferred_element_type=f32) + b1_ref[...]
        h = _layernorm(h, lnfg_ref[...], lnfb_ref[...])
        h = jnp.maximum(h, 0.0)  # ReLU (Dropout p=0.0 -> identity)
        x2 = x2 + jnp.dot(h, w2_ref[...], preferred_element_type=f32) + b2_ref[...]

        out_ref[...] = x2

    return kernel


# ------------------------------- wrapper -----------------------------------

def _fold_attn(w_in, b_in, w_out, b_out, f, scale):
    """Host-side algebraic folds for one single-head MultiheadAttention.

    w_in: (F, 3F) already transposed so q = x @ w_in[:, :F] + b_in[:, :F], etc.
    Returns (Wqk, bqk, Wvo, bvo):
      scores (up to a per-query softmax-invariant constant) = (x @ Wqk + bqk) · kv^T
      output = (attn @ kv) @ Wvo + bvo
    """
    wq = w_in[:, 0 * f:1 * f]
    wk = w_in[:, 1 * f:2 * f]
    wv = w_in[:, 2 * f:3 * f]
    bq = b_in[:, 0 * f:1 * f]
    bv = b_in[:, 2 * f:3 * f]
    # b_k dropped: shifts every score of a query by the same constant.
    wqk = scale * (wq @ wk.T)
    bqk = scale * (bq @ wk.T)
    wvo = wv @ w_out
    bvo = bv @ w_out + b_out
    return wqk, bqk, wvo, bvo


def att_decoder_f(x, m, params):
    """x: (B, K, S, F), m: (B*K, Sm, F) -> (B, K, S, F).  Single head only."""
    b, k, s, f = x.shape
    bk = b * k
    sm = m.shape[1]
    scale = 1.0 / math.sqrt(float(f))

    # Host-side layout plumbing (free): flatten query rows so every row-wise
    # matmul in the kernel uses one (B*K*S, F) M dimension; duplicate m in a
    # pre-transposed layout for the cross-attention score matmul.
    xf = x.reshape(bk * s, f)
    mT = jnp.swapaxes(m, 1, 2)  # (BK, F, Sm)

    # Host-side algebraic folds (exact, modulo the softmax-invariant b_k drop
    # and rows-sum-to-1 bias fold).
    sa_wqk, sa_bqk, sa_wvo, sa_bvo = _fold_attn(
        params["sa_win"], params["sa_bin"], params["sa_wo"], params["sa_bo"], f, scale)
    ca_wqk, ca_bqk, ca_wvo, ca_bvo = _fold_attn(
        params["ca_win"], params["ca_bin"], params["ca_wo"], params["ca_bo"], f, scale)

    # LayerNorm gamma/beta split host-side -> no sublane slicing in-kernel.
    ln1g, ln1b = params["ln1"][0:1, :], params["ln1"][1:2, :]
    ln2g, ln2b = params["ln2"][0:1, :], params["ln2"][1:2, :]
    ln3g, ln3b = params["ln3"][0:1, :], params["ln3"][1:2, :]
    lnfg, lnfb = params["lnf"][0:1, :], params["lnf"][1:2, :]

    p_args = [
        ln1g, ln1b,
        sa_wqk, sa_bqk, sa_wvo, sa_bvo,
        ln2g, ln2b,
        ca_wqk, ca_bqk, ca_wvo, ca_bvo,
        ln3g, ln3b,
        params["w1"], params["b1"], lnfg, lnfb, params["w2"], params["b2"],
    ]

    def full_spec(arr):
        # whole (tiny) parameter array resident in VMEM
        nd = arr.ndim
        return pl.BlockSpec(arr.shape, lambda i, _nd=nd: (0,) * _nd)

    in_specs = (
        [pl.BlockSpec((bk * s, f), lambda i: (0, 0)),        # flattened x
         pl.BlockSpec((bk, sm, f), lambda i: (0, 0, 0)),     # m
         pl.BlockSpec((bk, f, sm), lambda i: (0, 0, 0))]     # m^T (duplicate)
        + [full_spec(a) for a in p_args]
    )

    # Single grid step: everything fits in VMEM at these sizes, so one step
    # avoids all per-grid-step overhead.  Scaling path: tile over BK with
    # resident weights, mark that axis "parallel" (uses both v7x TCs), set
    # vmem_limit_bytes, and use bf16 MXU operands at realistic F.
    out = pl.pallas_call(
        _make_kernel(bk, s, sm, f),
        out_shape=jax.ShapeDtypeStruct((bk * s, f), x.dtype),
        grid=(1,),
        in_specs=in_specs,
        out_specs=pl.BlockSpec((bk * s, f), lambda i: (0, 0)),
        compiler_params=pltpu.CompilerParams(
            dimension_semantics=("arbitrary",)),
    )(xf, m, mT, *p_args)

    return out.reshape(b, k, s, f)


# --------------------------- pure-JAX reference ----------------------------

def _ref_ln(t, gb):
    mean = jnp.mean(t, axis=-1, keepdims=True)
    var = jnp.mean(jnp.square(t - mean), axis=-1, keepdims=True)
    return (t - mean) * jax.lax.rsqrt(var + EPS) * gb[0] + gb[1]


def _ref_mha(xq, xkv, w_in, b_in, w_out, b_out):
    F = xq.shape[-1]
    q = jnp.einsum("bsf,fg->bsg", xq, w_in[:, 0 * F:1 * F]) + b_in[:, 0 * F:1 * F]
    k = jnp.einsum("bsf,fg->bsg", xkv, w_in[:, 1 * F:2 * F]) + b_in[:, 1 * F:2 * F]
    v = jnp.einsum("bsf,fg->bsg", xkv, w_in[:, 2 * F:3 * F]) + b_in[:, 2 * F:3 * F]
    scores = jnp.einsum("bqf,bkf->bqk", q / math.sqrt(float(F)), k)
    attn = jax.nn.softmax(scores, axis=-1)
    out = jnp.einsum("bqk,bkf->bqf", attn, v)
    return jnp.einsum("bqf,fg->bqg", out, w_out) + b_out


def reference(x, m, P):
    b, k, s, f = x.shape
    xf = x.reshape(-1, s, f)
    x1 = _ref_ln(xf, P["ln1"])
    x1 = x1 + _ref_mha(x1, x1, P["sa_win"], P["sa_bin"], P["sa_wo"], P["sa_bo"])
    x2 = _ref_ln(x1, P["ln2"])
    x2 = x2 + _ref_mha(x2, m, P["ca_win"], P["ca_bin"], P["ca_wo"], P["ca_bo"])
    x3 = _ref_ln(x2, P["ln3"])
    h = jnp.einsum("bsf,fg->bsg", x3, P["w1"]) + P["b1"]
    h = _ref_ln(h, P["lnf"])
    h = jnp.maximum(h, 0.0)
    x3 = x3 + jnp.einsum("bsg,gf->bsf", h, P["w2"]) + P["b2"]
    return x3.reshape(b, k, s, f)


# ------------------------------- param init --------------------------------

def init_params(key, dim, feed_dim):
    ks = jax.random.split(key, 8)

    def ln_param(d):
        return jnp.stack([jnp.ones((d,), jnp.float32),
                          jnp.zeros((d,), jnp.float32)], axis=0)  # (2, d)

    def attn_params(kq):
        k1, k2, k3, k4 = jax.random.split(kq, 4)
        in_w = 0.2 * jax.random.normal(k1, (3 * dim, dim), jnp.float32)   # in_proj_weight
        in_b = 0.1 * jax.random.normal(k2, (3 * dim,), jnp.float32)       # in_proj_bias
        out_w = 0.2 * jax.random.normal(k3, (dim, dim), jnp.float32)      # out_proj.weight
        out_b = 0.1 * jax.random.normal(k4, (dim,), jnp.float32)          # out_proj.bias
        return (in_w.T, in_b.reshape(1, 3 * dim), out_w.T, out_b.reshape(1, dim))

    sa_win, sa_bin, sa_wo, sa_bo = attn_params(ks[0])
    ca_win, ca_bin, ca_wo, ca_bo = attn_params(ks[1])

    fw1 = 0.2 * jax.random.normal(ks[2], (feed_dim, dim), jnp.float32)   # nn.Linear(dim, feed_dim).weight
    fb1 = 0.1 * jax.random.normal(ks[3], (feed_dim,), jnp.float32)
    fw2 = 0.2 * jax.random.normal(ks[4], (dim, feed_dim), jnp.float32)   # nn.Linear(feed_dim, dim).weight
    fb2 = 0.1 * jax.random.normal(ks[5], (dim,), jnp.float32)

    return {
        "ln1": ln_param(dim),
        "sa_win": sa_win, "sa_bin": sa_bin, "sa_wo": sa_wo, "sa_bo": sa_bo,
        "ln2": ln_param(dim),
        "ca_win": ca_win, "ca_bin": ca_bin, "ca_wo": ca_wo, "ca_bo": ca_bo,
        "ln3": ln_param(dim),
        "w1": fw1.T, "b1": fb1.reshape(1, feed_dim),
        "lnf": ln_param(feed_dim),
        "w2": fw2.T, "b2": fb2.reshape(1, dim),
    }


# ---------------------------------- main ------------------------------------

if __name__ == "__main__":
    DIM, HEADERS, FEED_DIM = 2, 1, 10   # module defaults
    assert HEADERS == 1, "kernel implements the single-head (module default) case only"
    B, K, S, SM = 2, 3, 8, 6

    key = jax.random.PRNGKey(0)
    kx, km, kp = jax.random.split(key, 3)
    x = jax.random.normal(kx, (B, K, S, DIM), jnp.float32)
    m = jax.random.normal(km, (B * K, SM, DIM), jnp.float32)
    params = init_params(kp, DIM, FEED_DIM)

    out = att_decoder_f(x, m, params)
    out = jax.block_until_ready(out)

    ref = reference(x, m, params)
    assert out.shape == (B, K, S, DIM)
    assert jnp.allclose(out, ref, rtol=1e-3, atol=1e-3), (
        f"max abs err = {jnp.max(jnp.abs(out - ref))}")

    print("KERNEL_OK")
</pallas_src>

<mosaic_0001>
module attributes {stable_mosaic.version = 11 : i64} {
  func.func @kernel(%arg0: i32, %arg1: memref<48x2xf32, #tpu.memory_space<vmem>>, %arg2: memref<6x6x2xf32, #tpu.memory_space<vmem>>, %arg3: memref<6x2x6xf32, #tpu.memory_space<vmem>>, %arg4: memref<1x2xf32, #tpu.memory_space<vmem>>, %arg5: memref<1x2xf32, #tpu.memory_space<vmem>>, %arg6: memref<2x2xf32, #tpu.memory_space<vmem>>, %arg7: memref<1x2xf32, #tpu.memory_space<vmem>>, %arg8: memref<2x2xf32, #tpu.memory_space<vmem>>, %arg9: memref<1x2xf32, #tpu.memory_space<vmem>>, %arg10: memref<1x2xf32, #tpu.memory_space<vmem>>, %arg11: memref<1x2xf32, #tpu.memory_space<vmem>>, %arg12: memref<2x2xf32, #tpu.memory_space<vmem>>, %arg13: memref<1x2xf32, #tpu.memory_space<vmem>>, %arg14: memref<2x2xf32, #tpu.memory_space<vmem>>, %arg15: memref<1x2xf32, #tpu.memory_space<vmem>>, %arg16: memref<1x2xf32, #tpu.memory_space<vmem>>, %arg17: memref<1x2xf32, #tpu.memory_space<vmem>>, %arg18: memref<2x10xf32, #tpu.memory_space<vmem>>, %arg19: memref<1x10xf32, #tpu.memory_space<vmem>>, %arg20: memref<1x10xf32, #tpu.memory_space<vmem>>, %arg21: memref<1x10xf32, #tpu.memory_space<vmem>>, %arg22: memref<10x2xf32, #tpu.memory_space<vmem>>, %arg23: memref<1x2xf32, #tpu.memory_space<vmem>>, %arg24: memref<48x2xf32, #tpu.memory_space<vmem>>) attributes {dimension_semantics = [#tpu.dimension_semantics<arbitrary>], iteration_bounds = array<i64: 1>, scalar_prefetch = 0 : i64, scratch_operands = 0 : i64, tpu.core_type = #tpu.core_type<tc>, window_params = [{pipeline_mode = #tpu.pipeline_mode<synchronous>, transform_indices = @transform_0, window_bounds = array<i64: 48, 2>}, {pipeline_mode = #tpu.pipeline_mode<synchronous>, transform_indices = @transform_1, window_bounds = array<i64: 6, 6, 2>}, {pipeline_mode = #tpu.pipeline_mode<synchronous>, transform_indices = @transform_2, window_bounds = array<i64: 6, 2, 6>}, {pipeline_mode = #tpu.pipeline_mode<synchronous>, transform_indices = @transform_3, window_bounds = array<i64: 1, 2>}, {pipeline_mode = #tpu.pipeline_mode<synchronous>, transform_indices = @transform_4, window_bounds = array<i64: 1, 2>}, {pipeline_mode = #tpu.pipeline_mode<synchronous>, transform_indices = @transform_5, window_bounds = array<i64: 2, 2>}, {pipeline_mode = #tpu.pipeline_mode<synchronous>, transform_indices = @transform_6, window_bounds = array<i64: 1, 2>}, {pipeline_mode = #tpu.pipeline_mode<synchronous>, transform_indices = @transform_7, window_bounds = array<i64: 2, 2>}, {pipeline_mode = #tpu.pipeline_mode<synchronous>, transform_indices = @transform_8, window_bounds = array<i64: 1, 2>}, {pipeline_mode = #tpu.pipeline_mode<synchronous>, transform_indices = @transform_9, window_bounds = array<i64: 1, 2>}, {pipeline_mode = #tpu.pipeline_mode<synchronous>, transform_indices = @transform_10, window_bounds = array<i64: 1, 2>}, {pipeline_mode = #tpu.pipeline_mode<synchronous>, transform_indices = @transform_11, window_bounds = array<i64: 2, 2>}, {pipeline_mode = #tpu.pipeline_mode<synchronous>, transform_indices = @transform_12, window_bounds = array<i64: 1, 2>}, {pipeline_mode = #tpu.pipeline_mode<synchronous>, transform_indices = @transform_13, window_bounds = array<i64: 2, 2>}, {pipeline_mode = #tpu.pipeline_mode<synchronous>, transform_indices = @transform_14, window_bounds = array<i64: 1, 2>}, {pipeline_mode = #tpu.pipeline_mode<synchronous>, transform_indices = @transform_15, window_bounds = array<i64: 1, 2>}, {pipeline_mode = #tpu.pipeline_mode<synchronous>, transform_indices = @transform_16, window_bounds = array<i64: 1, 2>}, {pipeline_mode = #tpu.pipeline_mode<synchronous>, transform_indices = @transform_17, window_bounds = array<i64: 2, 10>}, {pipeline_mode = #tpu.pipeline_mode<synchronous>, transform_indices = @transform_18, window_bounds = array<i64: 1, 10>}, {pipeline_mode = #tpu.pipeline_mode<synchronous>, transform_indices = @transform_19, window_bounds = array<i64: 1, 10>}, {pipeline_mode = #tpu.pipeline_mode<synchronous>, transform_indices = @transform_20, window_bounds = array<i64: 1, 10>}, {pipeline_mode = #tpu.pipeline_mode<synchronous>, transform_indices = @transform_21, window_bounds = array<i64: 10, 2>}, {pipeline_mode = #tpu.pipeline_mode<synchronous>, transform_indices = @transform_22, window_bounds = array<i64: 1, 2>}, {pipeline_mode = #tpu.pipeline_mode<synchronous>, transform_indices = @transform_23, window_bounds = array<i64: 48, 2>}]} {
    %c0 = arith.constant 0 : index
    %c0_0 = arith.constant 0 : index
    %0 = vector.load %arg1[%c0, %c0_0] : memref<48x2xf32, #tpu.memory_space<vmem>>, vector<48x2xf32>
    %c0_1 = arith.constant 0 : index
    %c0_2 = arith.constant 0 : index
    %c0_3 = arith.constant 0 : index
    %1 = vector.load %arg2[%c0_1, %c0_2, %c0_3] : memref<6x6x2xf32, #tpu.memory_space<vmem>>, vector<6x6x2xf32>
    %c0_4 = arith.constant 0 : index
    %c0_5 = arith.constant 0 : index
    %c0_6 = arith.constant 0 : index
    %2 = vector.load %arg3[%c0_4, %c0_5, %c0_6] : memref<6x2x6xf32, #tpu.memory_space<vmem>>, vector<6x2x6xf32>
    %c0_7 = arith.constant 0 : index
    %c0_8 = arith.constant 0 : index
    %3 = vector.load %arg4[%c0_7, %c0_8] : memref<1x2xf32, #tpu.memory_space<vmem>>, vector<1x2xf32>
    %c0_9 = arith.constant 0 : index
    %c0_10 = arith.constant 0 : index
    %4 = vector.load %arg5[%c0_9, %c0_10] : memref<1x2xf32, #tpu.memory_space<vmem>>, vector<1x2xf32>
    %cst = arith.constant dense<0.000000e+00> : vector<48xf32>
    %5 = vector.multi_reduction <add>, %0, %cst [1] : vector<48x2xf32> to vector<48xf32>
    %6 = vector.shape_cast %5 : vector<48xf32> to vector<48x1xf32>
    %cst_11 = arith.constant 2.000000e+00 : f32
    %7 = vector.broadcast %cst_11 : f32 to vector<48x1xf32>
    %8 = arith.divf %6, %7 : vector<48x1xf32>
    %9 = vector.broadcast %8 : vector<48x1xf32> to vector<48x2xf32>
    %10 = arith.subf %0, %9 : vector<48x2xf32>
    %11 = arith.mulf %10, %10 : vector<48x2xf32>
    %cst_12 = arith.constant dense<0.000000e+00> : vector<48xf32>
    %12 = vector.multi_reduction <add>, %11, %cst_12 [1] : vector<48x2xf32> to vector<48xf32>
    %13 = vector.shape_cast %12 : vector<48xf32> to vector<48x1xf32>
    %cst_13 = arith.constant 2.000000e+00 : f32
    %14 = vector.broadcast %cst_13 : f32 to vector<48x1xf32>
    %15 = arith.divf %13, %14 : vector<48x1xf32>
    %cst_14 = arith.constant 9.99999974E-6 : f32
    %16 = vector.broadcast %cst_14 : f32 to vector<48x1xf32>
    %17 = arith.addf %15, %16 : vector<48x1xf32>
    %18 = math.rsqrt %17 : vector<48x1xf32>
    %19 = vector.broadcast %8 : vector<48x1xf32> to vector<48x2xf32>
    %20 = arith.subf %0, %19 : vector<48x2xf32>
    %21 = vector.broadcast %18 : vector<48x1xf32> to vector<48x2xf32>
    %22 = arith.mulf %20, %21 : vector<48x2xf32>
    %23 = vector.broadcast %3 : vector<1x2xf32> to vector<48x2xf32>
    %24 = arith.mulf %22, %23 : vector<48x2xf32>
    %25 = vector.broadcast %4 : vector<1x2xf32> to vector<48x2xf32>
    %26 = arith.addf %24, %25 : vector<48x2xf32>
    %27 = vector.shape_cast %26 : vector<48x2xf32> to vector<6x8x2xf32>
    %c0_15 = arith.constant 0 : index
    %c0_16 = arith.constant 0 : index
    %28 = vector.load %arg6[%c0_15, %c0_16] : memref<2x2xf32, #tpu.memory_space<vmem>>, vector<2x2xf32>
    %cst_17 = arith.constant dense<0.000000e+00> : vector<48x2xf32>
    %29 = tpu.matmul %26, %28, %cst_17 {dimension_numbers = #tpu.dot_dimension_numbers<[1], [0], [0], [1], [0, 0, 1, 1], [], []>} : vector<48x2xf32>, vector<2x2xf32>, vector<48x2xf32> -> vector<48x2xf32>
    %c0_18 = arith.constant 0 : index
    %c0_19 = arith.constant 0 : index
    %30 = vector.load %arg7[%c0_18, %c0_19] : memref<1x2xf32, #tpu.memory_space<vmem>>, vector<1x2xf32>
    %31 = vector.broadcast %30 : vector<1x2xf32> to vector<48x2xf32>
    %32 = arith.addf %29, %31 : vector<48x2xf32>
    %33 = vector.shape_cast %32 : vector<48x2xf32> to vector<6x8x2xf32>
    "tpu.trace_start"() <{level = 10 : i32, message = "bqf,bkf->bqk"}> : () -> ()
    %cst_20 = arith.constant dense<0.000000e+00> : vector<6x8x8xf32>
    %34 = tpu.matmul %33, %27, %cst_20 {dimension_numbers = #tpu.dot_dimension_numbers<[2], [2], [1], [1], [0, 0, 0, 1, 1, 1], [0], [0]>} : vector<6x8x2xf32>, vector<6x8x2xf32>, vector<6x8x8xf32> -> vector<6x8x8xf32>
    "tpu.trace_stop"() : () -> ()
    %cst_21 = arith.constant dense<0xFF800000> : vector<6x8xf32>
    %35 = vector.multi_reduction <maximumf>, %34, %cst_21 [2] : vector<6x8x8xf32> to vector<6x8xf32>
    %36 = vector.shape_cast %35 : vector<6x8xf32> to vector<6x8x1xf32>
    %37 = vector.broadcast %36 : vector<6x8x1xf32> to vector<6x8x8xf32>
    %38 = arith.subf %34, %37 : vector<6x8x8xf32>
    %39 = math.exp %38 : vector<6x8x8xf32>
    %cst_22 = arith.constant dense<0.000000e+00> : vector<6x8xf32>
    %40 = vector.multi_reduction <add>, %39, %cst_22 [2] : vector<6x8x8xf32> to vector<6x8xf32>
    %41 = vector.shape_cast %40 : vector<6x8xf32> to vector<6x8x1xf32>
    %42 = tpu.reciprocal %41 {approx = true} : vector<6x8x1xf32> -> vector<6x8x1xf32>
    %43 = vector.broadcast %42 : vector<6x8x1xf32> to vector<6x8x8xf32>
    %44 = arith.mulf %39, %43 : vector<6x8x8xf32>
    "tpu.trace_start"() <{level = 10 : i32, message = "bqk,bkf->bqf"}> : () -> ()
    %cst_23 = arith.constant dense<0.000000e+00> : vector<6x8x2xf32>
    %45 = tpu.matmul %44, %27, %cst_23 {dimension_numbers = #tpu.dot_dimension_numbers<[2], [1], [1], [2], [0, 0, 0, 1, 1, 2], [0], [0]>} : vector<6x8x8xf32>, vector<6x8x2xf32>, vector<6x8x2xf32> -> vector<6x8x2xf32>
    "tpu.trace_stop"() : () -> ()
    %46 = vector.shape_cast %45 : vector<6x8x2xf32> to vector<48x2xf32>
    %c0_24 = arith.constant 0 : index
    %c0_25 = arith.constant 0 : index
    %47 = vector.load %arg8[%c0_24, %c0_25] : memref<2x2xf32, #tpu.memory_space<vmem>>, vector<2x2xf32>
    %cst_26 = arith.constant dense<0.000000e+00> : vector<48x2xf32>
    %48 = tpu.matmul %46, %47, %cst_26 {dimension_numbers = #tpu.dot_dimension_numbers<[1], [0], [0], [1], [0, 0, 1, 1], [], []>} : vector<48x2xf32>, vector<2x2xf32>, vector<48x2xf32> -> vector<48x2xf32>
    %49 = arith.addf %26, %48 : vector<48x2xf32>
    %c0_27 = arith.constant 0 : index
    %c0_28 = arith.constant 0 : index
    %50 = vector.load %arg9[%c0_27, %c0_28] : memref<1x2xf32, #tpu.memory_space<vmem>>, vector<1x2xf32>
    %51 = vector.broadcast %50 : vector<1x2xf32> to vector<48x2xf32>
    %52 = arith.addf %49, %51 : vector<48x2xf32>
    %c0_29 = arith.constant 0 : index
    %c0_30 = arith.constant 0 : index
    %53 = vector.load %arg10[%c0_29, %c0_30] : memref<1x2xf32, #tpu.memory_space<vmem>>, vector<1x2xf32>
    %c0_31 = arith.constant 0 : index
    %c0_32 = arith.constant 0 : index
    %54 = vector.load %arg11[%c0_31, %c0_32] : memref<1x2xf32, #tpu.memory_space<vmem>>, vector<1x2xf32>
    %cst_33 = arith.constant dense<0.000000e+00> : vector<48xf32>
    %55 = vector.multi_reduction <add>, %52, %cst_33 [1] : vector<48x2xf32> to vector<48xf32>
    %56 = vector.shape_cast %55 : vector<48xf32> to vector<48x1xf32>
    %cst_34 = arith.constant 2.000000e+00 : f32
    %57 = vector.broadcast %cst_34 : f32 to vector<48x1xf32>
    %58 = arith.divf %56, %57 : vector<48x1xf32>
    %59 = vector.broadcast %58 : vector<48x1xf32> to vector<48x2xf32>
    %60 = arith.subf %52, %59 : vector<48x2xf32>
    %61 = arith.mulf %60, %60 : vector<48x2xf32>
    %cst_35 = arith.constant dense<0.000000e+00> : vector<48xf32>
    %62 = vector.multi_reduction <add>, %61, %cst_35 [1] : vector<48x2xf32> to vector<48xf32>
    %63 = vector.shape_cast %62 : vector<48xf32> to vector<48x1xf32>
    %cst_36 = arith.constant 2.000000e+00 : f32
    %64 = vector.broadcast %cst_36 : f32 to vector<48x1xf32>
    %65 = arith.divf %63, %64 : vector<48x1xf32>
    %cst_37 = arith.constant 9.99999974E-6 : f32
    %66 = vector.broadcast %cst_37 : f32 to vector<48x1xf32>
    %67 = arith.addf %65, %66 : vector<48x1xf32>
    %68 = math.rsqrt %67 : vector<48x1xf32>
    %69 = vector.broadcast %58 : vector<48x1xf32> to vector<48x2xf32>
    %70 = arith.subf %52, %69 : vector<48x2xf32>
    %71 = vector.broadcast %68 : vector<48x1xf32> to vector<48x2xf32>
    %72 = arith.mulf %70, %71 : vector<48x2xf32>
    %73 = vector.broadcast %53 : vector<1x2xf32> to vector<48x2xf32>
    %74 = arith.mulf %72, %73 : vector<48x2xf32>
    %75 = vector.broadcast %54 : vector<1x2xf32> to vector<48x2xf32>
    %76 = arith.addf %74, %75 : vector<48x2xf32>
    %c0_38 = arith.constant 0 : index
    %c0_39 = arith.constant 0 : index
    %77 = vector.load %arg12[%c0_38, %c0_39] : memref<2x2xf32, #tpu.memory_space<vmem>>, vector<2x2xf32>
    %cst_40 = arith.constant dense<0.000000e+00> : vector<48x2xf32>
    %78 = tpu.matmul %76, %77, %cst_40 {dimension_numbers = #tpu.dot_dimension_numbers<[1], [0], [0], [1], [0, 0, 1, 1], [], []>} : vector<48x2xf32>, vector<2x2xf32>, vector<48x2xf32> -> vector<48x2xf32>
    %c0_41 = arith.constant 0 : index
    %c0_42 = arith.constant 0 : index
    %79 = vector.load %arg13[%c0_41, %c0_42] : memref<1x2xf32, #tpu.memory_space<vmem>>, vector<1x2xf32>
    %80 = vector.broadcast %79 : vector<1x2xf32> to vector<48x2xf32>
    %81 = arith.addf %78, %80 : vector<48x2xf32>
    %82 = vector.shape_cast %81 : vector<48x2xf32> to vector<6x8x2xf32>
    "tpu.trace_start"() <{level = 10 : i32, message = "bqf,bfk->bqk"}> : () -> ()
    %cst_43 = arith.constant dense<0.000000e+00> : vector<6x8x6xf32>
    %83 = tpu.matmul %82, %2, %cst_43 {dimension_numbers = #tpu.dot_dimension_numbers<[2], [1], [1], [2], [0, 0, 0, 1, 1, 2], [0], [0]>} : vector<6x8x2xf32>, vector<6x2x6xf32>, vector<6x8x6xf32> -> vector<6x8x6xf32>
    "tpu.trace_stop"() : () -> ()
    %cst_44 = arith.constant dense<0xFF800000> : vector<6x8xf32>
    %84 = vector.multi_reduction <maximumf>, %83, %cst_44 [2] : vector<6x8x6xf32> to vector<6x8xf32>
    %85 = vector.shape_cast %84 : vector<6x8xf32> to vector<6x8x1xf32>
    %86 = vector.broadcast %85 : vector<6x8x1xf32> to vector<6x8x6xf32>
    %87 = arith.subf %83, %86 : vector<6x8x6xf32>
    %88 = math.exp %87 : vector<6x8x6xf32>
    %cst_45 = arith.constant dense<0.000000e+00> : vector<6x8xf32>
    %89 = vector.multi_reduction <add>, %88, %cst_45 [2] : vector<6x8x6xf32> to vector<6x8xf32>
    %90 = vector.shape_cast %89 : vector<6x8xf32> to vector<6x8x1xf32>
    %91 = tpu.reciprocal %90 {approx = true} : vector<6x8x1xf32> -> vector<6x8x1xf32>
    %92 = vector.broadcast %91 : vector<6x8x1xf32> to vector<6x8x6xf32>
    %93 = arith.mulf %88, %92 : vector<6x8x6xf32>
    "tpu.trace_start"() <{level = 10 : i32, message = "bqk,bkf->bqf"}> : () -> ()
    %cst_46 = arith.constant dense<0.000000e+00> : vector<6x8x2xf32>
    %94 = tpu.matmul %93, %1, %cst_46 {dimension_numbers = #tpu.dot_dimension_numbers<[2], [1], [1], [2], [0, 0, 0, 1, 1, 2], [0], [0]>} : vector<6x8x6xf32>, vector<6x6x2xf32>, vector<6x8x2xf32> -> vector<6x8x2xf32>
    "tpu.trace_stop"() : () -> ()
    %95 = vector.shape_cast %94 : vector<6x8x2xf32> to vector<48x2xf32>
    %c0_47 = arith.constant 0 : index
    %c0_48 = arith.constant 0 : index
    %96 = vector.load %arg14[%c0_47, %c0_48] : memref<2x2xf32, #tpu.memory_space<vmem>>, vector<2x2xf32>
    %cst_49 = arith.constant dense<0.000000e+00> : vector<48x2xf32>
    %97 = tpu.matmul %95, %96, %cst_49 {dimension_numbers = #tpu.dot_dimension_numbers<[1], [0], [0], [1], [0, 0, 1, 1], [], []>} : vector<48x2xf32>, vector<2x2xf32>, vector<48x2xf32> -> vector<48x2xf32>
    %98 = arith.addf %76, %97 : vector<48x2xf32>
    %c0_50 = arith.constant 0 : index
    %c0_51 = arith.constant 0 : index
    %99 = vector.load %arg15[%c0_50, %c0_51] : memref<1x2xf32, #tpu.memory_space<vmem>>, vector<1x2xf32>
    %100 = vector.broadcast %99 : vector<1x2xf32> to vector<48x2xf32>
    %101 = arith.addf %98, %100 : vector<48x2xf32>
    %c0_52 = arith.constant 0 : index
    %c0_53 = arith.constant 0 : index
    %102 = vector.load %arg16[%c0_52, %c0_53] : memref<1x2xf32, #tpu.memory_space<vmem>>, vector<1x2xf32>
    %c0_54 = arith.constant 0 : index
    %c0_55 = arith.constant 0 : index
    %103 = vector.load %arg17[%c0_54, %c0_55] : memref<1x2xf32, #tpu.memory_space<vmem>>, vector<1x2xf32>
    %cst_56 = arith.constant dense<0.000000e+00> : vector<48xf32>
    %104 = vector.multi_reduction <add>, %101, %cst_56 [1] : vector<48x2xf32> to vector<48xf32>
    %105 = vector.shape_cast %104 : vector<48xf32> to vector<48x1xf32>
    %cst_57 = arith.constant 2.000000e+00 : f32
    %106 = vector.broadcast %cst_57 : f32 to vector<48x1xf32>
    %107 = arith.divf %105, %106 : vector<48x1xf32>
    %108 = vector.broadcast %107 : vector<48x1xf32> to vector<48x2xf32>
    %109 = arith.subf %101, %108 : vector<48x2xf32>
    %110 = arith.mulf %109, %109 : vector<48x2xf32>
    %cst_58 = arith.constant dense<0.000000e+00> : vector<48xf32>
    %111 = vector.multi_reduction <add>, %110, %cst_58 [1] : vector<48x2xf32> to vector<48xf32>
    %112 = vector.shape_cast %111 : vector<48xf32> to vector<48x1xf32>
    %cst_59 = arith.constant 2.000000e+00 : f32
    %113 = vector.broadcast %cst_59 : f32 to vector<48x1xf32>
    %114 = arith.divf %112, %113 : vector<48x1xf32>
    %cst_60 = arith.constant 9.99999974E-6 : f32
    %115 = vector.broadcast %cst_60 : f32 to vector<48x1xf32>
    %116 = arith.addf %114, %115 : vector<48x1xf32>
    %117 = math.rsqrt %116 : vector<48x1xf32>
    %118 = vector.broadcast %107 : vector<48x1xf32> to vector<48x2xf32>
    %119 = arith.subf %101, %118 : vector<48x2xf32>
    %120 = vector.broadcast %117 : vector<48x1xf32> to vector<48x2xf32>
    %121 = arith.mulf %119, %120 : vector<48x2xf32>
    %122 = vector.broadcast %102 : vector<1x2xf32> to vector<48x2xf32>
    %123 = arith.mulf %121, %122 : vector<48x2xf32>
    %124 = vector.broadcast %103 : vector<1x2xf32> to vector<48x2xf32>
    %125 = arith.addf %123, %124 : vector<48x2xf32>
    %c0_61 = arith.constant 0 : index
    %c0_62 = arith.constant 0 : index
    %126 = vector.load %arg18[%c0_61, %c0_62] : memref<2x10xf32, #tpu.memory_space<vmem>>, vector<2x10xf32>
    %cst_63 = arith.constant dense<0.000000e+00> : vector<48x10xf32>
    %127 = tpu.matmul %125, %126, %cst_63 {dimension_numbers = #tpu.dot_dimension_numbers<[1], [0], [0], [1], [0, 0, 1, 1], [], []>} : vector<48x2xf32>, vector<2x10xf32>, vector<48x10xf32> -> vector<48x10xf32>
    %c0_64 = arith.constant 0 : index
    %c0_65 = arith.constant 0 : index
    %128 = vector.load %arg19[%c0_64, %c0_65] : memref<1x10xf32, #tpu.memory_space<vmem>>, vector<1x10xf32>
    %129 = vector.broadcast %128 : vector<1x10xf32> to vector<48x10xf32>
    %130 = arith.addf %127, %129 : vector<48x10xf32>
    %c0_66 = arith.constant 0 : index
    %c0_67 = arith.constant 0 : index
    %131 = vector.load %arg20[%c0_66, %c0_67] : memref<1x10xf32, #tpu.memory_space<vmem>>, vector<1x10xf32>
    %c0_68 = arith.constant 0 : index
    %c0_69 = arith.constant 0 : index
    %132 = vector.load %arg21[%c0_68, %c0_69] : memref<1x10xf32, #tpu.memory_space<vmem>>, vector<1x10xf32>
    %cst_70 = arith.constant dense<0.000000e+00> : vector<48xf32>
    %133 = vector.multi_reduction <add>, %130, %cst_70 [1] : vector<48x10xf32> to vector<48xf32>
    %134 = vector.shape_cast %133 : vector<48xf32> to vector<48x1xf32>
    %cst_71 = arith.constant 1.000000e+01 : f32
    %135 = vector.broadcast %cst_71 : f32 to vector<48x1xf32>
    %136 = arith.divf %134, %135 : vector<48x1xf32>
    %137 = vector.broadcast %136 : vector<48x1xf32> to vector<48x10xf32>
    %138 = arith.subf %130, %137 : vector<48x10xf32>
    %139 = arith.mulf %138, %138 : vector<48x10xf32>
    %cst_72 = arith.constant dense<0.000000e+00> : vector<48xf32>
    %140 = vector.multi_reduction <add>, %139, %cst_72 [1] : vector<48x10xf32> to vector<48xf32>
    %141 = vector.shape_cast %140 : vector<48xf32> to vector<48x1xf32>
    %cst_73 = arith.constant 1.000000e+01 : f32
    %142 = vector.broadcast %cst_73 : f32 to vector<48x1xf32>
    %143 = arith.divf %141, %142 : vector<48x1xf32>
    %cst_74 = arith.constant 9.99999974E-6 : f32
    %144 = vector.broadcast %cst_74 : f32 to vector<48x1xf32>
    %145 = arith.addf %143, %144 : vector<48x1xf32>
    %146 = math.rsqrt %145 : vector<48x1xf32>
    %147 = vector.broadcast %136 : vector<48x1xf32> to vector<48x10xf32>
    %148 = arith.subf %130, %147 : vector<48x10xf32>
    %149 = vector.broadcast %146 : vector<48x1xf32> to vector<48x10xf32>
    %150 = arith.mulf %148, %149 : vector<48x10xf32>
    %151 = vector.broadcast %131 : vector<1x10xf32> to vector<48x10xf32>
    %152 = arith.mulf %150, %151 : vector<48x10xf32>
    %153 = vector.broadcast %132 : vector<1x10xf32> to vector<48x10xf32>
    %154 = arith.addf %152, %153 : vector<48x10xf32>
    %cst_75 = arith.constant 0.000000e+00 : f32
    %155 = vector.broadcast %cst_75 : f32 to vector<48x10xf32>
    %156 = arith.maximumf %154, %155 : vector<48x10xf32>
    %c0_76 = arith.constant 0 : index
    %c0_77 = arith.constant 0 : index
    %157 = vector.load %arg22[%c0_76, %c0_77] : memref<10x2xf32, #tpu.memory_space<vmem>>, vector<10x2xf32>
    %cst_78 = arith.constant dense<0.000000e+00> : vector<48x2xf32>
    %158 = tpu.matmul %156, %157, %cst_78 {dimension_numbers = #tpu.dot_dimension_numbers<[1], [0], [0], [1], [0, 0, 1, 1], [], []>} : vector<48x10xf32>, vector<10x2xf32>, vector<48x2xf32> -> vector<48x2xf32>
    %159 = arith.addf %125, %158 : vector<48x2xf32>
    %c0_79 = arith.constant 0 : index
    %c0_80 = arith.constant 0 : index
    %160 = vector.load %arg23[%c0_79, %c0_80] : memref<1x2xf32, #tpu.memory_space<vmem>>, vector<1x2xf32>
    %161 = vector.broadcast %160 : vector<1x2xf32> to vector<48x2xf32>
    %162 = arith.addf %159, %161 : vector<48x2xf32>
    %c0_81 = arith.constant 0 : index
    %c0_82 = arith.constant 0 : index
    %163 = vector.load %arg24[%c0_81, %c0_82] : memref<48x2xf32, #tpu.memory_space<vmem>>, vector<48x2xf32>
    tpu.vector_store %arg24[%c0_81, %c0_82], %162 {strides = array<i32>} : memref<48x2xf32, #tpu.memory_space<vmem>>, vector<48x2xf32>,
    return
  }
  func.func @transform_0(%arg0: i32) -> (i32, i32) {
    %c0_i32 = arith.constant 0 : i32
    %c0_i32_0 = arith.constant 0 : i32
    %c0_i32_1 = arith.constant 0 : i32
    return %c0_i32, %c0_i32_0 : i32, i32
  }
  func.func @transform_1(%arg0: i32) -> (i32, i32, i32) {
    %c0_i32 = arith.constant 0 : i32
    %c0_i32_0 = arith.constant 0 : i32
    %c0_i32_1 = arith.constant 0 : i32
    %c0_i32_2 = arith.constant 0 : i32
    return %c0_i32, %c0_i32_0, %c0_i32_1 : i32, i32, i32
  }
  func.func @transform_2(%arg0: i32) -> (i32, i32, i32) {
    %c0_i32 = arith.constant 0 : i32
    %c0_i32_0 = arith.constant 0 : i32
    %c0_i32_1 = arith.constant 0 : i32
    %c0_i32_2 = arith.constant 0 : i32
    return %c0_i32, %c0_i32_0, %c0_i32_1 : i32, i32, i32
  }
  func.func @transform_3(%arg0: i32) -> (i32, i32) {
    %c0_i32 = arith.constant 0 : i32
    %c0_i32_0 = arith.constant 0 : i32
    %c0_i32_1 = arith.constant 0 : i32
    return %c0_i32, %c0_i32_0 : i32, i32
  }
  func.func @transform_4(%arg0: i32) -> (i32, i32) {
    %c0_i32 = arith.constant 0 : i32
    %c0_i32_0 = arith.constant 0 : i32
    %c0_i32_1 = arith.constant 0 : i32
    return %c0_i32, %c0_i32_0 : i32, i32
  }
  func.func @transform_5(%arg0: i32) -> (i32, i32) {
    %c0_i32 = arith.constant 0 : i32
    %c0_i32_0 = arith.constant 0 : i32
    %c0_i32_1 = arith.constant 0 : i32
    return %c0_i32, %c0_i32_0 : i32, i32
  }
  func.func @transform_6(%arg0: i32) -> (i32, i32) {
    %c0_i32 = arith.constant 0 : i32
    %c0_i32_0 = arith.constant 0 : i32
    %c0_i32_1 = arith.constant 0 : i32
    return %c0_i32, %c0_i32_0 : i32, i32
  }
  func.func @transform_7(%arg0: i32) -> (i32, i32) {
    %c0_i32 = arith.constant 0 : i32
    %c0_i32_0 = arith.constant 0 : i32
    %c0_i32_1 = arith.constant 0 : i32
    return %c0_i32, %c0_i32_0 : i32, i32
  }
  func.func @transform_8(%arg0: i32) -> (i32, i32) {
    %c0_i32 = arith.constant 0 : i32
    %c0_i32_0 = arith.constant 0 : i32
    %c0_i32_1 = arith.constant 0 : i32
    return %c0_i32, %c0_i32_0 : i32, i32
  }
  func.func @transform_9(%arg0: i32) -> (i32, i32) {
    %c0_i32 = arith.constant 0 : i32
    %c0_i32_0 = arith.constant 0 : i32
    %c0_i32_1 = arith.constant 0 : i32
    return %c0_i32, %c0_i32_0 : i32, i32
  }
  func.func @transform_10(%arg0: i32) -> (i32, i32) {
    %c0_i32 = arith.constant 0 : i32
    %c0_i32_0 = arith.constant 0 : i32
    %c0_i32_1 = arith.constant 0 : i32
    return %c0_i32, %c0_i32_0 : i32, i32
  }
  func.func @transform_11(%arg0: i32) -> (i32, i32) {
    %c0_i32 = arith.constant 0 : i32
    %c0_i32_0 = arith.constant 0 : i32
    %c0_i32_1 = arith.constant 0 : i32
    return %c0_i32, %c0_i32_0 : i32, i32
  }
  func.func @transform_12(%arg0: i32) -> (i32, i32) {
    %c0_i32 = arith.constant 0 : i32
    %c0_i32_0 = arith.constant 0 : i32
    %c0_i32_1 = arith.constant 0 : i32
    return %c0_i32, %c0_i32_0 : i32, i32
  }
  func.func @transform_13(%arg0: i32) -> (i32, i32) {
    %c0_i32 = arith.constant 0 : i32
    %c0_i32_0 = arith.constant 0 : i32
    %c0_i32_1 = arith.constant 0 : i32
    return %c0_i32, %c0_i32_0 : i32, i32
  }
  func.func @transform_14(%arg0: i32) -> (i32, i32) {
    %c0_i32 = arith.constant 0 : i32
    %c0_i32_0 = arith.constant 0 : i32
    %c0_i32_1 = arith.constant 0 : i32
    return %c0_i32, %c0_i32_0 : i32, i32
  }
  func.func @transform_15(%arg0: i32) -> (i32, i32) {
    %c0_i32 = arith.constant 0 : i32
    %c0_i32_0 = arith.constant 0 : i32
    %c0_i32_1 = arith.constant 0 : i32
    return %c0_i32, %c0_i32_0 : i32, i32
  }
  func.func @transform_16(%arg0: i32) -> (i32, i32) {
    %c0_i32 = arith.constant 0 : i32
    %c0_i32_0 = arith.constant 0 : i32
    %c0_i32_1 = arith.constant 0 : i32
    return %c0_i32, %c0_i32_0 : i32, i32
  }
  func.func @transform_17(%arg0: i32) -> (i32, i32) {
    %c0_i32 = arith.constant 0 : i32
    %c0_i32_0 = arith.constant 0 : i32
    %c0_i32_1 = arith.constant 0 : i32
    return %c0_i32, %c0_i32_0 : i32, i32
  }
  func.func @transform_18(%arg0: i32) -> (i32, i32) {
    %c0_i32 = arith.constant 0 : i32
    %c0_i32_0 = arith.constant 0 : i32
    %c0_i32_1 = arith.constant 0 : i32
    return %c0_i32, %c0_i32_0 : i32, i32
  }
  func.func @transform_19(%arg0: i32) -> (i32, i32) {
    %c0_i32 = arith.constant 0 : i32
    %c0_i32_0 = arith.constant 0 : i32
    %c0_i32_1 = arith.constant 0 : i32
    return %c0_i32, %c0_i32_0 : i32, i32
  }
  func.func @transform_20(%arg0: i32) -> (i32, i32) {
    %c0_i32 = arith.constant 0 : i32
    %c0_i32_0 = arith.constant 0 : i32
    %c0_i32_1 = arith.constant 0 : i32
    return %c0_i32, %c0_i32_0 : i32, i32
  }
  func.func @transform_21(%arg0: i32) -> (i32, i32) {
    %c0_i32 = arith.constant 0 : i32
    %c0_i32_0 = arith.constant 0 : i32
    %c0_i32_1 = arith.constant 0 : i32
    return %c0_i32, %c0_i32_0 : i32, i32
  }
  func.func @transform_22(%arg0: i32) -> (i32, i32) {
    %c0_i32 = arith.constant 0 : i32
    %c0_i32_0 = arith.constant 0 : i32
    %c0_i32_1 = arith.constant 0 : i32
    return %c0_i32, %c0_i32_0 : i32, i32
  }
  func.func @transform_23(%arg0: i32) -> (i32, i32) {
    %c0_i32 = arith.constant 0 : i32
    %c0_i32_0 = arith.constant 0 : i32
    %c0_i32_1 = arith.constant 0 : i32
    return %c0_i32, %c0_i32_0 : i32, i32
  }
}

</mosaic_0001>

<bundles_post_ra>
// kernel: tpu_custom_call.1
= control target key start
LH: loop header
LB: loop body
LE: loop exit
PB: predicated region body
PF: predicated region fallthrough
CT: control target
= control target key end

     0   :  { %vm94_vm0 = vcmask 15360   ;;  %vm224_vm1 = vcmask 1041408   ;;  %v3715_v43 = vmov 0.0   ;;  %vm3716_vm2 = vmmov 0   ;;  %s4406_s0 = inlined_call_operand.vmem [shape: f32[48,2], index: 0, kind: input, shape index: {}]   ;;  %s4407_s5 = inlined_call_operand.vmem [shape: f32[2,2], index: 5, kind: input, shape index: {}]   ;;  %s4408_s3 = inlined_call_operand.vmem [shape: f32[1,2], index: 3, kind: input, shape index: {}]   ;;  %s4409_s4 = inlined_call_operand.vmem [shape: f32[1,2], index: 4, kind: input, shape index: {}]   ;;  %s4410_s6 = inlined_call_operand.vmem [shape: f32[1,2], index: 6, kind: input, shape index: {}]   ;;  %s4411_s7 = inlined_call_operand.vmem [shape: f32[2,2], index: 7, kind: input, shape index: {}]   ;;  %s4412_s8 = inlined_call_operand.vmem [shape: f32[1,2], index: 8, kind: input, shape index: {}]   ;;  %s4413_s11 = inlined_call_operand.vmem [shape: f32[2,2], index: 11, kind: input, shape index: {}]   ;;  %s4414_s2 = inlined_call_operand.vmem [shape: f32[6,2,6], index: 2, kind: input, shape index: {}]   ;;  %s4415_s9 = inlined_call_operand.vmem [shape: f32[1,2], index: 9, kind: input, shape index: {}]   ;;  %s4416_s10 = inlined_call_operand.vmem [shape: f32[1,2], index: 10, kind: input, shape index: {}]   ;;  %s4417_s12 = inlined_call_operand.vmem [shape: f32[1,2], index: 12, kind: input, shape index: {}]   ;;  %s4418_s1 = inlined_call_operand.vmem [shape: f32[6,6,2], index: 1, kind: input, shape index: {}]   ;;  %s4419_s13 = inlined_call_operand.vmem [shape: f32[2,2], index: 13, kind: input, shape index: {}]   ;;  %s4420_s14 = inlined_call_operand.vmem [shape: f32[1,2], index: 14, kind: input, shape index: {}]   ;;  %s4421_s17 = inlined_call_operand.vmem [shape: f32[2,10], index: 17, kind: input, shape index: {}]   ;;  %s4422_s15 = inlined_call_operand.vmem [shape: f32[1,2], index: 15, kind: input, shape index: {}]   ;;  %s4423_s16 = inlined_call_operand.vmem [shape: f32[1,2], index: 16, kind: input, shape index: {}]   ;;  %s4424_s18 = inlined_call_operand.vmem [shape: f32[1,10], index: 18, kind: input, shape index: {}]   ;;  %s4425_s21 = inlined_call_operand.vmem [shape: f32[10,2], index: 21, kind: input, shape index: {}]   ;;  %s4426_s19 = inlined_call_operand.vmem [shape: f32[1,10], index: 19, kind: input, shape index: {}]   ;;  %s4427_s20 = inlined_call_operand.vmem [shape: f32[1,10], index: 20, kind: input, shape index: {}]   ;;  %s4428_s22 = inlined_call_operand.vmem [shape: f32[1,2], index: 22, kind: input, shape index: {}]   ;;  %s4429_s23 = inlined_call_operand.vmem [shape: f32[48,2], index: 23, kind: output, shape index: {}]  }
   0x1   :  { %4431 = sst [smem:[#allocation2_spill]] %s4406_s0  ;;  %3438 = vmatprep.subr.mxu1 %v3715_v43  ;;  %3440 = vmatprep.mubr.msk.f32.mxu1 %vm3716_vm2, %v3715_v43  ;;  %vm761_vm3 = vcmask 64512   ;;  %vm2086_vm4 = vcmask 48128   ;;  %vm2156_vm5 = vcmask 1045504   ;;  %vm2976_vm6 = vcmask 80896  }
   0x2   :  { %4432 = sst [smem:[#allocation3_spill]] %s4407_s5  ;;  %s4439_s24 = sld [smem:[#allocation2_spill]]  ;;  %vm3717_vm7 = vmmov 1  }
   0x3   :  { %4433 = sst [smem:[#allocation4_spill]] %s4408_s3  ;;  %vm3611_vm8 = vmpackc.low %vm224_vm1, %vm3717_vm7 }
   0x4   :  { %4434 = sst [smem:[#allocation5_spill]] %s4409_s4  ;;  %s4441_s25 = sld [smem:[#allocation4_spill]] }
   0x5   :  { %4435 = sst [smem:[#allocation6_spill]] %s4410_s6  ;;  %s4440_s6 = sld [smem:[#allocation3_spill]] }
   0x6   :  { %4436 = sst [smem:[#allocation7_spill]] %s4411_s7  ;;  %s4442_s26 = sld [smem:[#allocation5_spill]] }
   0x7   :  { %4437 = sst [smem:[#allocation8_spill]] %s4412_s8  ;;  %s4443_s27 = sld [smem:[#allocation6_spill]] }
   0x8   :  { %4438 = sst [smem:[#allocation9_spill]] %s4413_s11  ;;  %v74_v0 = vld [vmem:[%s4439_s24] sm:$0xff]  ;;  %v76_v1 = vld [vmem:[%s4439_s24 + $0x10] sm:$0xff]  ;;  %v75_v2 = vld [vmem:[%s4439_s24 + $0x8] sm:$0xff]  ;;  %s4444_s29 = sld [smem:[#allocation7_spill]] }
   0x9   :  { %v95_v3 = vsel %vm94_vm0, %v74_v0, 0.0  ;;  %v101_v4 = vsel %vm94_vm0, %v76_v1, 0.0  ;;  %v77_v5 = vld [vmem:[%s4439_s24 + $0x18] sm:$0xff]  ;;  %v98_v6 = vsel %vm94_vm0, %v75_v2, 0.0  ;;  %v78_v8 = vld [vmem:[%s4439_s24 + $0x20] sm:$0xff]  ;;  %v79_v9 = vld [vmem:[%s4439_s24 + $0x28] sm:$0xff] }
   0xa   :  { %96 = vadd.xlane.f32.xlu0 %v95_v3  ;;  %102 = vadd.xlane.f32.xlu1 %v101_v4  ;;  %v104_v7 = vsel %vm94_vm0, %v77_v5, 0.0  ;;  %v107_v10 = vsel %vm94_vm0, %v78_v8, 0.0  ;;  %v110_v11 = vsel %vm94_vm0, %v79_v9, 0.0  ;;  %v3233_v63 = vld [vmem:[%s4441_s25] ss:$0 sm:$0xff]  ;;  %s4446_s25 = sld [smem:[#allocation9_spill]] }
   0xb   :  { %v198_v42 = vld [vmem:[%s4440_s6] sm:$0x3]  ;;  %s4445_s6 = sld [smem:[#allocation8_spill]] }
   0xc   :  { %3422 = vmatprep.subr.msk.mxu0 %vm224_vm1, %v198_v42 }
   0xd   :  { %3423 = vmatpush3.msk.msra.mxu0 %vm224_vm1, %v198_v42 }
   0xe   :  { %99 = vadd.xlane.f32.xlu0 %v98_v6  ;;  %105 = vadd.xlane.f32.xlu1 %v104_v7 }
   0xf   :  { %3433 = vmatprep.subr.mxu0 %v3715_v43 }
  0x12   :  { %108 = vadd.xlane.f32.xlu0 %v107_v10  ;;  %111 = vadd.xlane.f32.xlu1 %v110_v11 }
  0x97   :  { %v97_v12 = vpop.xlane.xlu0 %96  ;;  %v103_v13 = vpop.xlane.xlu1 %102 }
  0x98   :  { %v114_v14 = vmul.f32 0.5, %v97_v12  ;;  %v116_v15 = vmul.f32 0.5, %v103_v13 }
  0x9a   :  { %v3862_v16 = vsub.f32 %v74_v0, %v114_v14  ;;  %v3864_v17 = vsub.f32 %v76_v1, %v116_v15  ;;  %v3234_v1 = vld [vmem:[%s4442_s26] ss:$0 sm:$0xff] }
  0x9b   :  { %v100_v18 = vpop.xlane.xlu0 %99  ;;  %v106_v19 = vpop.xlane.xlu1 %105 }
  0x9c   :  { %v115_v20 = vmul.f32 0.5, %v100_v18  ;;  %v117_v21 = vmul.f32 0.5, %v106_v19  ;;  %v126_v22 = vmul.f32 %v3862_v16, %v3862_v16  ;;  %v128_v23 = vmul.f32 %v3864_v17, %v3864_v17 }
  0x9e   :  { %v3870_v24 = vsub.f32 %v75_v2, %v115_v20  ;;  %v3872_v25 = vsub.f32 %v77_v5, %v117_v21  ;;  %v132_v26 = vsel %vm94_vm0, %v126_v22, 0.0  ;;  %v138_v29 = vsel %vm94_vm0, %v128_v23, 0.0 }
  0x9f   :  { %133 = vadd.xlane.f32.xlu0 %v132_v26  ;;  %v109_v27 = vpop.xlane.xlu0 %108  ;;  %v112_v28 = vpop.xlane.xlu1 %111 }
  0xa0   :  { %v118_v30 = vmul.f32 0.5, %v109_v27  ;;  %v119_v31 = vmul.f32 0.5, %v112_v28  ;;  %v127_v32 = vmul.f32 %v3870_v24, %v3870_v24  ;;  %v129_v33 = vmul.f32 %v3872_v25, %v3872_v25 }
  0xa2   :  { %v3880_v34 = vsub.f32 %v78_v8, %v118_v30  ;;  %v3882_v35 = vsub.f32 %v79_v9, %v119_v31  ;;  %v135_v36 = vsel %vm94_vm0, %v127_v32, 0.0  ;;  %v141_v37 = vsel %vm94_vm0, %v129_v33, 0.0 }
  0xa3   :  { %139 = vadd.xlane.f32.xlu0 %v138_v29  ;;  %136 = vadd.xlane.f32.xlu1 %v135_v36 }
  0xa4   :  { %v130_v38 = vmul.f32 %v3880_v34, %v3880_v34  ;;  %v131_v39 = vmul.f32 %v3882_v35, %v3882_v35 }
  0xa6   :  { %v144_v40 = vsel %vm94_vm0, %v130_v38, 0.0  ;;  %v147_v41 = vsel %vm94_vm0, %v131_v39, 0.0 }
  0xa7   :  { %142 = vadd.xlane.f32.xlu1 %v141_v37  ;;  %145 = vadd.xlane.f32.xlu0 %v144_v40 }
  0xab   :  { %148 = vadd.xlane.f32.xlu1 %v147_v41 }
 0x12c   :  { %v134_v44 = vpop.xlane.xlu0 %133 }
 0x12d   :  { %v150_v45 = vmul.f32 0.5, %v134_v44 }
 0x12f   :  { %v156_v46 = vadd.f32 1e-05, %v150_v45 }
 0x130   :  { %v137_v47 = vpop.xlane.xlu1 %136  ;;  %v140_v48 = vpop.xlane.xlu0 %139 }
 0x131   :  { %3619 = vrsqrt.f32 %v156_v46  ;;  %v151_v49 = vmul.f32 0.5, %v137_v47  ;;  %v152_v50 = vmul.f32 0.5, %v140_v48 }
 0x133   :  { %v157_v51 = vadd.f32 1e-05, %v151_v49  ;;  %v158_v52 = vadd.f32 1e-05, %v152_v50 }
 0x134   :  { %v143_v53 = vpop.xlane.xlu1 %142  ;;  %v146_v54 = vpop.xlane.xlu0 %145 }
 0x135   :  { %3621 = vrsqrt.f32 %v157_v51  ;;  %v153_v55 = vmul.f32 0.5, %v143_v53  ;;  %v154_v56 = vmul.f32 0.5, %v146_v54 }
 0x136   :  { %3623 = vrsqrt.f32 %v158_v52 }
 0x137   :  { %v159_v57 = vadd.f32 1e-05, %v153_v55  ;;  %v160_v58 = vadd.f32 1e-05, %v154_v56 }
 0x138   :  { %v149_v59 = vpop.xlane.xlu1 %148 }
 0x139   :  { %3625 = vrsqrt.f32 %v159_v57  ;;  %v155_v60 = vmul.f32 0.5, %v149_v59 }
 0x13a   :  { %3627 = vrsqrt.f32 %v160_v58 }
 0x13b   :  { %v3620_v61 = vpop.eup %3619  ;;  %v161_v62 = vadd.f32 1e-05, %v155_v60 }
 0x13c   :  { %v168_v0 = vmul.f32 %v3620_v61, %v3862_v16 }
 0x13d   :  { %3629 = vrsqrt.f32 %v161_v62 }
 0x13e   :  { %v180_v2 = vmul.f32 %v3233_v63, %v168_v0 }
 0x13f   :  { %v3622_v3 = vpop.eup %3621 }
 0x140   :  { %v3624_v4 = vpop.eup %3623  ;;  %v3906_v5 = vadd.f32 %v3234_v1, %v180_v2  ;;  %v169_v6 = vmul.f32 %v3622_v3, %v3870_v24  ;;  %v3235_v24 = vld [vmem:[%s4443_s27] ss:$0 sm:$0xff] }
 0x141   :  { %v170_v7 = vmul.f32 %v3624_v4, %v3864_v17 }
 0x142   :  { %3424 = vmatprep.mubr.msk.f32.mxu0 %vm94_vm0, %v3906_v5  ;;  %v181_v8 = vmul.f32 %v3233_v63, %v169_v6 }
 0x143   :  { %v3626_v9 = vpop.eup %3625  ;;  %v182_v10 = vmul.f32 %v3233_v63, %v170_v7 }
 0x144   :  { %v3628_v11 = vpop.eup %3627  ;;  %v3912_v12 = vadd.f32 %v3234_v1, %v181_v8  ;;  %v171_v13 = vmul.f32 %v3626_v9, %v3872_v25 }
 0x145   :  { %v3915_v14 = vadd.f32 %v3234_v1, %v182_v10  ;;  %v172_v15 = vmul.f32 %v3628_v11, %v3880_v34 }
 0x146   :  { %3425 = vmatmul.mubr.msk.f32.vlgmr.msra.gmra.mrb[0].mxu0 %vm94_vm0, %v3912_v12  ;;  %3439 = vmatpush3.xpose.msk.msra.mxu1 %vm94_vm0, %v3912_v12  ;;  %v183_v16 = vmul.f32 %v3233_v63, %v171_v13 }
 0x147   :  { %v3630_v17 = vpop.eup %3629  ;;  %3434 = vmatpush3.xpose.msk.msra.mxu0 %vm94_vm0, %v3906_v5  ;;  %3427 = vmatprep.mubr.msk.f32.mxu0 %vm94_vm0, %v3915_v14  ;;  %v184_v18 = vmul.f32 %v3233_v63, %v172_v15 }
 0x148   :  { %v3926_v19 = vadd.f32 %v3234_v1, %v183_v16  ;;  %v173_v20 = vmul.f32 %v3630_v17, %v3882_v35  ;;  %3443 = vmatprep.subr.mxu1 %v3715_v43  ;;  %3448 = vmatprep.subr.mxu0 %v3715_v43 }
 0x149   :  { %v3931_v21 = vadd.f32 %v3234_v1, %v184_v18 }
 0x14a   :  { %3428 = vmatmul.mubr.msk.f32.gmra.mrb[2].mxu0 %vm94_vm0, %v3926_v19  ;;  %v185_v22 = vmul.f32 %v3233_v63, %v173_v20 }
 0x14b   :  { %3430 = vmatprep.mubr.msk.f32.mxu0 %vm94_vm0, %v3931_v21 }
 0x14c   :  { %v3937_v23 = vadd.f32 %v3234_v1, %v185_v22 }
 0x14e   :  { %3431 = vmatmul.mubr.msk.f32.gmra.mrb[4].mxu0 %vm94_vm0, %v3937_v23 }
 0x14f   :  { %3435 = vmatprep.mubr.msk.f32.mxu0 %vm3716_vm2, %v3715_v43 }
 0x219   :  { %v3426_v25 = vpop.f32.mrb[0].mxu0 }
 0x21a   :  { %v300_v26 = vadd.f32 %v3426_v25, %v3235_v24  ;;  %v294_v27 = vpop.f32.mrb[1].mxu0 }
 0x21b   :  { %v295_v28 = vadd.f32 %v3235_v24, %v294_v27 }
 0x21c   :  { %3441 = vmatmul.mubr.msk.f32.vlgmr.msra.gmra.mrb[0].mxu1 %vm94_vm0, %v300_v26 }
 0x21d   :  { %3444 = vmatpush3.xpose.msk.msra.mxu1 %vm94_vm0, %v3915_v14  ;;  %v3429_v29 = vpop.f32.mrb[2].mxu0  ;;  %3436 = vmatmul.mubr.msk.f32.vlgmr.msra.gmra.mrb[6].mxu0 %vm94_vm0, %v295_v28 }
 0x21e   :  { %v310_v30 = vadd.f32 %v3429_v29, %v3235_v24  ;;  %3449 = vmatpush3.xpose.msk.msra.mxu0 %vm94_vm0, %v3926_v19  ;;  %v304_v31 = vpop.f32.mrb[3].mxu0  ;;  %3445 = vmatprep.mubr.msk.f32.mxu1 %vm3716_vm2, %v3715_v43 }
 0x21f   :  { %v305_v32 = vadd.f32 %v3235_v24, %v304_v31  ;;  %3450 = vmatprep.mubr.msk.f32.mxu0 %vm3716_vm2, %v3715_v43  ;;  %3453 = vmatprep.subr.mxu1 %v3715_v43 }
 0x220   :  { %3458 = vmatprep.subr.mxu0 %v3715_v43 }
 0x221   :  { %v3432_v33 = vpop.f32.mrb[4].mxu0  ;;  %3446 = vmatmul.mubr.msk.f32.vlgmr.msra.gmra.mrb[2].mxu1 %vm94_vm0, %v305_v32  ;;  %3451 = vmatmul.mubr.msk.f32.vlgmr.msra.gmra.mrb[8].mxu0 %vm94_vm0, %v310_v30 }
 0x222   :  { %v320_v34 = vadd.f32 %v3432_v33, %v3235_v24  ;;  %3454 = vmatpush3.xpose.msk.msra.mxu1 %vm94_vm0, %v3931_v21  ;;  %3459 = vmatpush3.xpose.msk.msra.mxu0 %vm94_vm0, %v3937_v23  ;;  %v314_v35 = vpop.f32.mrb[5].mxu0 }
 0x223   :  { %v315_v36 = vadd.f32 %v3235_v24, %v314_v35  ;;  %3455 = vmatprep.mubr.msk.f32.mxu1 %vm3716_vm2, %v3715_v43  ;;  %3460 = vmatprep.mubr.msk.f32.mxu0 %vm3716_vm2, %v3715_v43 }
 0x224   :  { %3463 = vmatprep.subr.mxu1 %v3715_v43  ;;  %3468 = vmatprep.subr.mxu0 %v3715_v43 }
 0x225   :  { %3456 = vmatmul.mubr.msk.f32.vlgmr.msra.gmra.mrb[4].mxu1 %vm94_vm0, %v315_v36  ;;  %3461 = vmatmul.mubr.msk.f32.vlgmr.msra.gmra.mrb[10].mxu0 %vm94_vm0, %v320_v34 }
 0x226   :  { %3464 = vmatpush3.msra.mxu1 %v3906_v5  ;;  %3469 = vmatpush3.msra.mxu0 %v3912_v12 }
 0x227   :  { %3470 = vmatprep.mubr.msk.f32.mxu0 %vm3716_vm2, %v3715_v43  ;;  %3478 = vmatprep.subr.mxu0 %v3715_v43 }
 0x228   :  { %3465 = vmatprep.mubr.msk.f32.mxu1 %vm3716_vm2, %v3715_v43  ;;  %3473 = vmatprep.subr.mxu1 %v3715_v43 }
 0x2ef   :  { %v465_v37 = vpop.f32.mrb[0].mxu1 }
 0x2f0   :  { %v392_v38 = vpop.f32.mrb[6].mxu0  ;;  %v3442_v39 = vpop.f32.mrb[1].mxu1  ;;  %v765_v40 = vsel %vm761_vm3, %v465_v37, -inf }
 0x2f1   :  { %766 = vmax.xlane.f32.xlu1 %v765_v40  ;;  %v3437_v41 = vpop.f32.mrb[7].mxu0  ;;  %v762_v42 = vsel %vm761_vm3, %v392_v38, -inf }
 0x2f2   :  { %763 = vmax.xlane.f32.xlu0 %v762_v42  ;;  %v1266_v42 = vld [vmem:[%s4444_s29] sm:$0x3] }
 0x2f4   :  { %v538_v44 = vpop.f32.mrb[2].mxu1  ;;  %v611_v45 = vpop.f32.mrb[8].mxu0 }
 0x2f5   :  { %v3447_v46 = vpop.f32.mrb[3].mxu1  ;;  %v3452_v47 = vpop.f32.mrb[9].mxu0  ;;  %v768_v48 = vsel %vm761_vm3, %v538_v44, -inf  ;;  %v771_v49 = vsel %vm761_vm3, %v611_v45, -inf }
 0x2f6   :  { %769 = vmax.xlane.f32.xlu0 %v768_v48  ;;  %772 = vmax.xlane.f32.xlu1 %v771_v49 }
 0x2f8   :  { %v684_v50 = vpop.f32.mrb[4].mxu1  ;;  %v757_v51 = vpop.f32.mrb[10].mxu0 }
 0x2f9   :  { %v3457_v52 = vpop.f32.mrb[5].mxu1  ;;  %v3462_v53 = vpop.f32.mrb[11].mxu0  ;;  %v777_v54 = vsel %vm761_vm3, %v757_v51, -inf  ;;  %v774_v55 = vsel %vm761_vm3, %v684_v50, -inf }
 0x2fa   :  { %778 = vmax.xlane.f32.xlu1 %v777_v54  ;;  %775 = vmax.xlane.f32.xlu0 %v774_v55 }
 0x37e   :  { %v767_v56 = vpop.xlane.xlu1 %766 }
 0x37f   :  { %v781_v57 = vsub.f32 %v465_v37, %v767_v56  ;;  %v764_v58 = vpop.xlane.xlu0 %763 }
 0x380   :  { %v780_v59 = vsub.f32 %v392_v38, %v764_v58 }
 0x381   :  { %v788_v60 = vmul.f32 1.442695, %v781_v57 }
 0x382   :  { %v786_v61 = vmul.f32 1.442695, %v780_v59 }
 0x383   :  { %3631 = vpow2.f32 %v788_v60  ;;  %v770_v62 = vpop.xlane.xlu0 %769  ;;  %v773_v63 = vpop.xlane.xlu1 %772 }
 0x384   :  { %3633 = vpow2.f32 %v786_v61  ;;  %v782_v0 = vsub.f32 %v538_v44, %v770_v62  ;;  %v783_v1 = vsub.f32 %v611_v45, %v773_v63  ;;  %v3268_v61 = vld [vmem:[%s4445_s6] ss:$0 sm:$0xff] }
 0x386   :  { %v790_v2 = vmul.f32 1.442695, %v782_v0  ;;  %v792_v3 = vmul.f32 1.442695, %v783_v1 }
 0x387   :  { %v779_v4 = vpop.xlane.xlu1 %778  ;;  %v776_v6 = vpop.xlane.xlu0 %775 }
 0x388   :  { %3635 = vpow2.f32 %v790_v2  ;;  %v785_v7 = vsub.f32 %v757_v51, %v779_v4  ;;  %v784_v8 = vsub.f32 %v684_v50, %v776_v6 }
 0x389   :  { %3637 = vpow2.f32 %v792_v3 }
 0x38a   :  { %v796_v9 = vmul.f32 1.442695, %v785_v7  ;;  %v794_v10 = vmul.f32 1.442695, %v784_v8 }
 0x38c   :  { %3639 = vpow2.f32 %v796_v9 }
 0x38d   :  { %v3632_v11 = vpop.eup %3631  ;;  %3641 = vpow2.f32 %v794_v10 }
 0x38e   :  { %v3634_v13 = vpop.eup %3633  ;;  %v801_v15 = vsel %vm761_vm3, %v3632_v11, 0.0 }
 0x38f   :  { %802 = vadd.xlane.f32.xlu1 %v801_v15  ;;  %v798_v16 = vsel %vm761_vm3, %v3634_v13, 0.0 }
 0x390   :  { %799 = vadd.xlane.f32.xlu0 %v798_v16 }
 0x392   :  { %v3636_v17 = vpop.eup %3635 }
 0x393   :  { %v3638_v18 = vpop.eup %3637  ;;  %v804_v20 = vsel %vm761_vm3, %v3636_v17, 0.0 }
 0x394   :  { %v807_v22 = vsel %vm761_vm3, %v3638_v18, 0.0  ;;  %805 = vadd.xlane.f32.xlu0 %v804_v20 }
 0x395   :  { %808 = vadd.xlane.f32.xlu1 %v807_v22 }
 0x396   :  { %v3640_v24 = vpop.eup %3639 }
 0x397   :  { %v3642_v25 = vpop.eup %3641  ;;  %v813_v26 = vsel %vm761_vm3, %v3640_v24, 0.0 }
 0x398   :  { %v810_v27 = vsel %vm761_vm3, %v3642_v25, 0.0 }
 0x399   :  { %814 = vadd.xlane.f32.xlu1 %v813_v26  ;;  %811 = vadd.xlane.f32.xlu0 %v810_v27 }
 0x41c   :  { %v803_v28 = vpop.xlane.xlu1 %802 }
 0x41d   :  { %3643 = vrcp.f32 %v803_v28  ;;  %v800_v29 = vpop.xlane.xlu0 %799 }
 0x41e   :  { %3645 = vrcp.f32 %v800_v29 }
 0x421   :  { %v806_v30 = vpop.xlane.xlu0 %805 }
 0x422   :  { %v809_v31 = vpop.xlane.xlu1 %808  ;;  %3647 = vrcp.f32 %v806_v30 }
 0x423   :  { %3649 = vrcp.f32 %v809_v31 }
 0x426   :  { %v815_v32 = vpop.xlane.xlu1 %814  ;;  %v812_v33 = vpop.xlane.xlu0 %811 }
 0x427   :  { %v3644_v34 = vpop.eup %3643  ;;  %3651 = vrcp.f32 %v815_v32 }
 0x428   :  { %v3646_v35 = vpop.eup %3645  ;;  %v823_v36 = vmul.f32 %v3644_v34, %v3632_v11  ;;  %3653 = vrcp.f32 %v812_v33 }
 0x429   :  { %v822_v37 = vmul.f32 %v3646_v35, %v3634_v13 }
 0x42a   :  { %3471 = vmatmul.mubr.msk.f32.vlgmr.msra.gmra.mrb[12].mxu0 %vm761_vm3, %v823_v36 }
 0x42b   :  { %3479 = vmatpush3.msra.mxu0 %v3926_v19  ;;  %3466 = vmatmul.mubr.msk.f32.vlgmr.msra.gmra.mrb[6].mxu1 %vm761_vm3, %v822_v37 }
 0x42c   :  { %v3648_v38 = vpop.eup %3647  ;;  %3474 = vmatpush3.msra.mxu1 %v3915_v14  ;;  %3475 = vmatprep.mubr.msk.f32.mxu1 %vm3716_vm2, %v3715_v43 }
 0x42d   :  { %v3650_v39 = vpop.eup %3649  ;;  %v824_v40 = vmul.f32 %v3648_v38, %v3636_v17  ;;  %3480 = vmatprep.mubr.msk.f32.mxu0 %vm3716_vm2, %v3715_v43  ;;  %3483 = vmatprep.subr.mxu1 %v3715_v43 }
 0x42e   :  { %v825_v41 = vmul.f32 %v3650_v39, %v3638_v18  ;;  %3488 = vmatprep.subr.mxu0 %v3715_v43 }
 0x42f   :  { %3476 = vmatmul.mubr.msk.f32.vlgmr.msra.gmra.mrb[8].mxu1 %vm761_vm3, %v824_v40 }
 0x430   :  { %3481 = vmatmul.mubr.msk.f32.vlgmr.msra.gmra.mrb[14].mxu0 %vm761_vm3, %v825_v41  ;;  %3484 = vmatpush3.msra.mxu1 %v3931_v21 }
 0x431   :  { %v3652_v44 = vpop.eup %3651  ;;  %3489 = vmatpush3.msra.mxu0 %v3937_v23  ;;  %3485 = vmatprep.mubr.msk.f32.mxu1 %vm3716_vm2, %v3715_v43 }
 0x432   :  { %v3654_v45 = vpop.eup %3653  ;;  %v827_v46 = vmul.f32 %v3652_v44, %v3640_v24  ;;  %3490 = vmatprep.mubr.msk.f32.mxu0 %vm3716_vm2, %v3715_v43  ;;  %3493 = vmatprep.subr.msk.mxu1 %vm224_vm1, %v1266_v42 }
 0x433   :  { %v826_v47 = vmul.f32 %v3654_v45, %v3642_v25 }
 0x434   :  { %3491 = vmatmul.mubr.msk.f32.vlgmr.msra.gmra.mrb[16].mxu0 %vm761_vm3, %v827_v46 }
 0x435   :  { %3486 = vmatmul.mubr.msk.f32.vlgmr.msra.gmra.mrb[10].mxu1 %vm761_vm3, %v826_v47 }
 0x436   :  { %3494 = vmatpush3.msk.msra.mxu1 %vm224_vm1, %v1266_v42 }
 0x437   :  { %3515 = vmatprep.subr.mxu1 %v3715_v43 }
 0x4fd   :  { %v970_v48 = vpop.f32.mrb[12].mxu0 }
 0x4fe   :  { %v897_v49 = vpop.f32.mrb[6].mxu1  ;;  %v3472_v50 = vpop.f32.mrb[13].mxu0 }
 0x4ff   :  { %v3467_v51 = vpop.f32.mrb[7].mxu1  ;;  %3495 = vmatprep.mubr.msk.f32.mxu1 %vm94_vm0, %v897_v49 }
 0x500   :  { %3496 = vmatmul.mubr.msk.f32.vlgmr.msra.gmra.mrb[12].mxu1 %vm94_vm0, %v970_v48 }
 0x502   :  { %v1043_v52 = vpop.f32.mrb[8].mxu1 }
 0x503   :  { %v1116_v53 = vpop.f32.mrb[14].mxu0  ;;  %v3477_v54 = vpop.f32.mrb[9].mxu1  ;;  %3498 = vmatprep.mubr.msk.f32.mxu1 %vm94_vm0, %v1043_v52  ;;  %v1506_v52 = vld [vmem:[%s4446_s25] sm:$0x3] }
 0x504   :  { %v3482_v55 = vpop.f32.mrb[15].mxu0  ;;  %3499 = vmatmul.mubr.msk.f32.gmra.mrb[14].mxu1 %vm94_vm0, %v1116_v53  ;;  %3504 = vmatprep.subr.msk.mxu0 %vm224_vm1, %v1506_v52  ;;  %v86_v53 = vld [vmem:[%s4414_s2] sm:$0x3] }
 0x505   :  { %3505 = vmatpush3.msk.msra.mxu0 %vm224_vm1, %v1506_v52  ;;  %3516 = vmatpush3.msk.msra.mxu1 %vm224_vm1, %v86_v53 }
 0x506   :  { %3520 = vmatprep.subr.mxu0 %v3715_v43  ;;  %3525 = vmatprep.subr.mxu1 %v3715_v43 }
 0x507   :  { %v1262_v56 = vpop.f32.mrb[16].mxu0 }
 0x508   :  { %v1189_v57 = vpop.f32.mrb[10].mxu1  ;;  %v3492_v58 = vpop.f32.mrb[17].mxu0 }
 0x509   :  { %v3487_v59 = vpop.f32.mrb[11].mxu1  ;;  %3501 = vmatprep.mubr.msk.f32.mxu1 %vm94_vm0, %v1189_v57 }
 0x50a   :  { %3502 = vmatmul.mubr.msk.f32.gmra.mrb[16].mxu1 %vm94_vm0, %v1262_v56 }
 0x50b   :  { %3517 = vmatprep.mubr.msk.f32.mxu1 %vm3716_vm2, %v3715_v43 }
 0x5d3   :  { %v3497_v60 = vpop.f32.mrb[12].mxu1 }
 0x5d4   :  { %v1384_v62 = vadd.f32 %v3497_v60, %v3912_v12  ;;  %v1354_v63 = vpop.f32.mrb[13].mxu1 }
 0x5d5   :  { %v1383_v0 = vadd.f32 %v1354_v63, %v3906_v5 }
 0x5d6   :  { %v1397_v1 = vadd.f32 %v3268_v61, %v1384_v62 }
 0x5d7   :  { %v3500_v2 = vpop.f32.mrb[14].mxu1  ;;  %v1396_v3 = vadd.f32 %v3268_v61, %v1383_v0 }
 0x5d8   :  { %v1386_v4 = vadd.f32 %v3500_v2, %v3926_v19  ;;  %v1364_v6 = vpop.f32.mrb[15].mxu1  ;;  %v1407_v7 = vsel %vm94_vm0, %v1397_v1, 0.0 }
 0x5d9   :  { %v1385_v8 = vadd.f32 %v1364_v6, %v3915_v14  ;;  %1408 = vadd.xlane.f32.xlu1 %v1407_v7  ;;  %v1404_v9 = vsel %vm94_vm0, %v1396_v3, 0.0 }
 0x5da   :  { %1405 = vadd.xlane.f32.xlu0 %v1404_v9  ;;  %v1399_v10 = vadd.f32 %v3268_v61, %v1386_v4 }
 0x5db   :  { %v1398_v11 = vadd.f32 %v3268_v61, %v1385_v8 }
 0x5dc   :  { %v1413_v12 = vsel %vm94_vm0, %v1399_v10, 0.0 }
 0x5dd   :  { %v3503_v13 = vpop.f32.mrb[16].mxu1  ;;  %1414 = vadd.xlane.f32.xlu1 %v1413_v12  ;;  %v1410_v5 = vsel %vm94_vm0, %v1398_v11, 0.0 }
 0x5de   :  { %v1388_v15 = vadd.f32 %v3503_v13, %v3937_v23  ;;  %v1374_v19 = vpop.f32.mrb[17].mxu1  ;;  %1411 = vadd.xlane.f32.xlu0 %v1410_v5  ;;  %v3270_v5 = vld [vmem:[%s4416_s10] ss:$0 sm:$0xff] }
 0x5df   :  { %v1387_v16 = vadd.f32 %v1374_v19, %v3931_v21 }
 0x5e0   :  { %v1401_v17 = vadd.f32 %v3268_v61, %v1388_v15 }
 0x5e1   :  { %v1400_v14 = vadd.f32 %v3268_v61, %v1387_v16 }
 0x5e2   :  { %v1419_v18 = vsel %vm94_vm0, %v1401_v17, 0.0 }
 0x5e3   :  { %1420 = vadd.xlane.f32.xlu1 %v1419_v18  ;;  %v1416_v20 = vsel %vm94_vm0, %v1400_v14, 0.0 }
 0x5e4   :  { %1417 = vadd.xlane.f32.xlu0 %v1416_v20 }
 0x666   :  { %v1409_v22 = vpop.xlane.xlu1 %1408 }
 0x667   :  { %v1423_v24 = vmul.f32 0.5, %v1409_v22  ;;  %v1406_v25 = vpop.xlane.xlu0 %1405 }
 0x668   :  { %v1422_v26 = vmul.f32 0.5, %v1406_v25  ;;  %v87_v25 = vld [vmem:[%s4414_s2 + $0x2] sm:$0x3] }
 0x669   :  { %v4043_v27 = vsub.f32 %v1397_v1, %v1423_v24 }
 0x66a   :  { %v4045_v28 = vsub.f32 %v1396_v3, %v1422_v26  ;;  %v1415_v23 = vpop.xlane.xlu1 %1414 }
 0x66b   :  { %v1425_v29 = vmul.f32 0.5, %v1415_v23  ;;  %v1412_v30 = vpop.xlane.xlu0 %1411  ;;  %v1435_v21 = vmul.f32 %v4043_v27, %v4043_v27 }
 0x66c   :  { %v1424_v31 = vmul.f32 0.5, %v1412_v30  ;;  %v1434_v32 = vmul.f32 %v4045_v28, %v4045_v28 }
 0x66d   :  { %v4051_v33 = vsub.f32 %v1399_v10, %v1425_v29  ;;  %v1443_v34 = vsel %vm94_vm0, %v1435_v21, 0.0  ;;  %v3269_v10 = vld [vmem:[%s4415_s9] ss:$0 sm:$0xff] }
 0x66e   :  { %v4054_v35 = vsub.f32 %v1398_v11, %v1424_v31  ;;  %1444 = vadd.xlane.f32.xlu1 %v1443_v34  ;;  %v1440_v36 = vsel %vm94_vm0, %v1434_v32, 0.0 }
 0x66f   :  { %1441 = vadd.xlane.f32.xlu0 %v1440_v36  ;;  %v1437_v37 = vmul.f32 %v4051_v33, %v4051_v33 }
 0x670   :  { %v1421_v38 = vpop.xlane.xlu1 %1420  ;;  %v1436_v39 = vmul.f32 %v4054_v35, %v4054_v35 }
 0x671   :  { %v1427_v40 = vmul.f32 0.5, %v1421_v38  ;;  %v1418_v41 = vpop.xlane.xlu0 %1417  ;;  %v1449_v42 = vsel %vm94_vm0, %v1437_v37, 0.0 }
 0x672   :  { %v1426_v44 = vmul.f32 0.5, %v1418_v41  ;;  %1450 = vadd.xlane.f32.xlu1 %v1449_v42  ;;  %v1446_v45 = vsel %vm94_vm0, %v1436_v39, 0.0  ;;  %v89_v39 = vld [vmem:[%s4414_s2 + $0x6] sm:$0x3]  ;;  %v88_v41 = vld [vmem:[%s4414_s2 + $0x4] sm:$0x3] }
 0x673   :  { %v4063_v46 = vsub.f32 %v1401_v17, %v1427_v40  ;;  %1447 = vadd.xlane.f32.xlu0 %v1446_v45 }
 0x674   :  { %v4065_v47 = vsub.f32 %v1400_v14, %v1426_v44 }
 0x675   :  { %v1439_v48 = vmul.f32 %v4063_v46, %v4063_v46 }
 0x676   :  { %v1438_v49 = vmul.f32 %v4065_v47, %v4065_v47 }
 0x677   :  { %v1455_v50 = vsel %vm94_vm0, %v1439_v48, 0.0  ;;  %v90_v48 = vld [vmem:[%s4414_s2 + $0x8] sm:$0x3] }
 0x678   :  { %1456 = vadd.xlane.f32.xlu1 %v1455_v50  ;;  %v1452_v51 = vsel %vm94_vm0, %v1438_v49, 0.0 }
 0x679   :  { %1453 = vadd.xlane.f32.xlu0 %v1452_v51 }
 0x6fb   :  { %v1445_v54 = vpop.xlane.xlu1 %1444 }
 0x6fc   :  { %v1459_v55 = vmul.f32 0.5, %v1445_v54  ;;  %v1442_v56 = vpop.xlane.xlu0 %1441 }
 0x6fd   :  { %v1458_v57 = vmul.f32 0.5, %v1442_v56 }
 0x6fe   :  { %v1465_v58 = vadd.f32 1e-05, %v1459_v55 }
 0x6ff   :  { %v1464_v59 = vadd.f32 1e-05, %v1458_v57  ;;  %v1451_v60 = vpop.xlane.xlu1 %1450 }
 0x700   :  { %3655 = vrsqrt.f32 %v1465_v58  ;;  %v1461_v61 = vmul.f32 0.5, %v1451_v60  ;;  %v1448_v62 = vpop.xlane.xlu0 %1447 }
 0x701   :  { %3657 = vrsqrt.f32 %v1464_v59  ;;  %v1460_v63 = vmul.f32 0.5, %v1448_v62 }
 0x702   :  { %v1467_v0 = vadd.f32 1e-05, %v1461_v61 }
 0x703   :  { %v1466_v1 = vadd.f32 1e-05, %v1460_v63 }
 0x704   :  { %3659 = vrsqrt.f32 %v1467_v0 }
 0x705   :  { %3661 = vrsqrt.f32 %v1466_v1  ;;  %v1457_v2 = vpop.xlane.xlu1 %1456 }
 0x706   :  { %v1463_v3 = vmul.f32 0.5, %v1457_v2  ;;  %v1454_v4 = vpop.xlane.xlu0 %1453 }
 0x707   :  { %v1462_v6 = vmul.f32 0.5, %v1454_v4 }
 0x708   :  { %v1469_v7 = vadd.f32 1e-05, %v1463_v3 }
 0x709   :  { %v1468_v8 = vadd.f32 1e-05, %v1462_v6 }
 0x70a   :  { %v3656_v9 = vpop.eup %3655  ;;  %3663 = vrsqrt.f32 %v1469_v7 }
 0x70b   :  { %v3658_v11 = vpop.eup %3657  ;;  %v1477_v12 = vmul.f32 %v3656_v9, %v4043_v27  ;;  %3665 = vrsqrt.f32 %v1468_v8 }
 0x70c   :  { %v1476_v13 = vmul.f32 %v3658_v11, %v4045_v28 }
 0x70d   :  { %v1489_v15 = vmul.f32 %v3269_v10, %v1477_v12 }
 0x70e   :  { %v3660_v19 = vpop.eup %3659  ;;  %v1488_v16 = vmul.f32 %v3269_v10, %v1476_v13 }
 0x70f   :  { %v3662_v17 = vpop.eup %3661  ;;  %v1479_v14 = vmul.f32 %v3660_v19, %v4051_v33  ;;  %v4096_v22 = vadd.f32 %v3270_v5, %v1489_v15 }
 0x710   :  { %v4093_v18 = vadd.f32 %v3270_v5, %v1488_v16  ;;  %v1478_v20 = vmul.f32 %v3662_v17, %v4054_v35  ;;  %v3271_v35 = vld [vmem:[%s4417_s12] ss:$0 sm:$0xff] }
 0x711   :  { %v1491_v24 = vmul.f32 %v3269_v10, %v1479_v14 }
 0x712   :  { %3506 = vmatprep.mubr.msk.f32.mxu0 %vm94_vm0, %v4093_v18  ;;  %v1490_v26 = vmul.f32 %v3269_v10, %v1478_v20 }
 0x713   :  { %3507 = vmatmul.mubr.msk.f32.vlgmr.msra.gmra.mrb[18].mxu0 %vm94_vm0, %v4096_v22  ;;  %v4108_v29 = vadd.f32 %v3270_v5, %v1491_v24 }
 0x714   :  { %v3664_v27 = vpop.eup %3663  ;;  %v4105_v28 = vadd.f32 %v3270_v5, %v1490_v26  ;;  %3521 = vmatpush3.msk.msra.mxu0 %vm224_vm1, %v87_v25 }
 0x715   :  { %v3666_v23 = vpop.eup %3665  ;;  %v1481_v30 = vmul.f32 %v3664_v27, %v4063_v46  ;;  %3530 = vmatprep.subr.mxu0 %v3715_v43  ;;  %v91_v46 = vld [vmem:[%s4414_s2 + $0xa] sm:$0x3] }
 0x716   :  { %3509 = vmatprep.mubr.msk.f32.mxu0 %vm94_vm0, %v4105_v28  ;;  %v1480_v21 = vmul.f32 %v3666_v23, %v4065_v47 }
 0x717   :  { %3510 = vmatmul.mubr.msk.f32.gmra.mrb[20].mxu0 %vm94_vm0, %v4108_v29  ;;  %v1493_v31 = vmul.f32 %v3269_v10, %v1481_v30 }
 0x718   :  { %v1492_v32 = vmul.f32 %v3269_v10, %v1480_v21 }
 0x719   :  { %v4119_v34 = vadd.f32 %v3270_v5, %v1493_v31 }
 0x71a   :  { %v4117_v33 = vadd.f32 %v3270_v5, %v1492_v32 }
 0x71c   :  { %3512 = vmatprep.mubr.msk.f32.mxu0 %vm94_vm0, %v4117_v33 }
 0x71d   :  { %3513 = vmatmul.mubr.msk.f32.gmra.mrb[22].mxu0 %vm94_vm0, %v4119_v34 }
 0x71e   :  { %3522 = vmatprep.mubr.msk.f32.mxu0 %vm3716_vm2, %v3715_v43 }
 0x7e6   :  { %v3508_v36 = vpop.f32.mrb[18].mxu0 }
 0x7e7   :  { %v1607_v37 = vadd.f32 %v3508_v36, %v3271_v35  ;;  %v1601_v38 = vpop.f32.mrb[19].mxu0 }
 0x7e8   :  { %v1602_v40 = vadd.f32 %v3271_v35, %v1601_v38 }
 0x7e9   :  { %3523 = vmatmul.mubr.msk.f32.vlgmr.msra.gmra.mrb[24].mxu0 %vm94_vm0, %v1607_v37 }
 0x7ea   :  { %v3511_v42 = vpop.f32.mrb[20].mxu0  ;;  %3518 = vmatmul.mubr.msk.f32.vlgmr.msra.gmra.mrb[18].mxu1 %vm94_vm0, %v1602_v40  ;;  %3531 = vmatpush3.msk.msra.mxu0 %vm224_vm1, %v89_v39 }
 0x7eb   :  { %v1617_v44 = vadd.f32 %v3511_v42, %v3271_v35  ;;  %3526 = vmatpush3.msk.msra.mxu1 %vm224_vm1, %v88_v41  ;;  %v1611_v45 = vpop.f32.mrb[21].mxu0  ;;  %3532 = vmatprep.mubr.msk.f32.mxu0 %vm3716_vm2, %v3715_v43 }
 0x7ec   :  { %v1612_v47 = vadd.f32 %v3271_v35, %v1611_v45  ;;  %3527 = vmatprep.mubr.msk.f32.mxu1 %vm3716_vm2, %v3715_v43  ;;  %3535 = vmatprep.subr.mxu1 %v3715_v43  ;;  %v80_v45 = vld [vmem:[%s4418_s1] sm:$0x3f] }
 0x7ed   :  { %3533 = vmatmul.mubr.msk.f32.vlgmr.msra.gmra.mrb[26].mxu0 %vm94_vm0, %v1617_v44  ;;  %3540 = vmatprep.subr.mxu0 %v3715_v43  ;;  %v81_v44 = vld [vmem:[%s4418_s1 + $0x8] sm:$0x3f] }
 0x7ee   :  { %3528 = vmatmul.mubr.msk.f32.vlgmr.msra.gmra.mrb[20].mxu1 %vm94_vm0, %v1612_v47  ;;  %3541 = vmatpush3.msk.msra.mxu0 %vm224_vm1, %v91_v46 }
 0x7ef   :  { %3536 = vmatpush3.msk.msra.mxu1 %vm224_vm1, %v90_v48  ;;  %3542 = vmatprep.mubr.msk.f32.mxu0 %vm3716_vm2, %v3715_v43 }
 0x7f0   :  { %v3514_v49 = vpop.f32.mrb[22].mxu0  ;;  %3537 = vmatprep.mubr.msk.f32.mxu1 %vm3716_vm2, %v3715_v43  ;;  %3545 = vmatprep.subr.mxu1 %v3715_v43 }
 0x7f1   :  { %v1627_v50 = vadd.f32 %v3514_v49, %v3271_v35  ;;  %v1621_v51 = vpop.f32.mrb[23].mxu0  ;;  %3550 = vmatprep.subr.mxu0 %v3715_v43 }
 0x7f2   :  { %v1622_v52 = vadd.f32 %v3271_v35, %v1621_v51 }
 0x7f3   :  { %3543 = vmatmul.mubr.msk.f32.vlgmr.msra.gmra.mrb[28].mxu0 %vm94_vm0, %v1627_v50 }
 0x7f4   :  { %3538 = vmatmul.mubr.msk.f32.vlgmr.msra.gmra.mrb[22].mxu1 %vm94_vm0, %v1622_v52  ;;  %3552 = vmatprep.mubr.msk.f32.mxu0 %vm3716_vm2, %v3715_v43 }
 0x7f5   :  { %3547 = vmatprep.mubr.msk.f32.mxu1 %vm3716_vm2, %v3715_v43  ;;  %3551 = vmatpush3.msk.msra.mxu0 %vm2156_vm5, %v81_v44 }
 0x7f6   :  { %3546 = vmatpush3.msk.msra.mxu1 %vm2156_vm5, %v80_v45  ;;  %3560 = vmatprep.subr.mxu0 %v3715_v43 }
 0x7f7   :  { %3555 = vmatprep.subr.mxu1 %v3715_v43 }
 0x8bc   :  { %v1778_v53 = vpop.f32.mrb[24].mxu0 }
 0x8bd   :  { %v1702_v54 = vpop.f32.mrb[18].mxu1  ;;  %v3524_v55 = vpop.f32.mrb[25].mxu0  ;;  %v2090_v56 = vsel %vm2086_vm4, %v1778_v53, -inf }
 0x8be   :  { %v3519_v57 = vpop.f32.mrb[19].mxu1  ;;  %2091 = vmax.xlane.f32.xlu1 %v2090_v56  ;;  %v2087_v58 = vsel %vm2086_vm4, %v1702_v54, -inf  ;;  %v83_v55 = vld [vmem:[%s4418_s1 + $0x18] sm:$0x3f] }
 0x8bf   :  { %2088 = vmax.xlane.f32.xlu0 %v2087_v58  ;;  %v82_v57 = vld [vmem:[%s4418_s1 + $0x10] sm:$0x3f] }
 0x8c0   :  { %v1930_v59 = vpop.f32.mrb[26].mxu0 }
 0x8c1   :  { %v1854_v60 = vpop.f32.mrb[20].mxu1  ;;  %v3534_v61 = vpop.f32.mrb[27].mxu0  ;;  %v2096_v62 = vsel %vm2086_vm4, %v1930_v59, -inf }
 0x8c2   :  { %v3529_v63 = vpop.f32.mrb[21].mxu1  ;;  %2097 = vmax.xlane.f32.xlu1 %v2096_v62  ;;  %v2093_v0 = vsel %vm2086_vm4, %v1854_v60, -inf  ;;  %v85_v61 = vld [vmem:[%s4418_s1 + $0x28] sm:$0x3f] }
 0x8c3   :  { %2094 = vmax.xlane.f32.xlu0 %v2093_v0  ;;  %v84_v63 = vld [vmem:[%s4418_s1 + $0x20] sm:$0x3f] }
 0x8c4   :  { %v2610_v0 = vld [vmem:[%s4419_s13] sm:$0x3] }
 0x8c6   :  { %v2082_v1 = vpop.f32.mrb[28].mxu0 }
 0x8c7   :  { %v2006_v2 = vpop.f32.mrb[22].mxu1  ;;  %v3544_v3 = vpop.f32.mrb[29].mxu0  ;;  %v2102_v4 = vsel %vm2086_vm4, %v2082_v1, -inf }
 0x8c8   :  { %2103 = vmax.xlane.f32.xlu1 %v2102_v4  ;;  %v3539_v6 = vpop.f32.mrb[23].mxu1  ;;  %v2099_v7 = vsel %vm2086_vm4, %v2006_v2, -inf }
 0x8c9   :  { %2100 = vmax.xlane.f32.xlu0 %v2099_v7 }
 0x94b   :  { %v2092_v8 = vpop.xlane.xlu1 %2091 }
 0x94c   :  { %v2106_v9 = vsub.f32 %v1778_v53, %v2092_v8  ;;  %v2089_v10 = vpop.xlane.xlu0 %2088 }
 0x94d   :  { %v2105_v11 = vsub.f32 %v1702_v54, %v2089_v10 }
 0x94e   :  { %v2113_v12 = vmul.f32 1.442695, %v2106_v9 }
 0x94f   :  { %v2111_v13 = vmul.f32 1.442695, %v2105_v11  ;;  %v2098_v5 = vpop.xlane.xlu1 %2097 }
 0x950   :  { %3667 = vpow2.f32 %v2113_v12  ;;  %v2108_v15 = vsub.f32 %v1930_v59, %v2098_v5  ;;  %v2095_v19 = vpop.xlane.xlu0 %2094 }
 0x951   :  { %3669 = vpow2.f32 %v2111_v13  ;;  %v2107_v16 = vsub.f32 %v1854_v60, %v2095_v19 }
 0x952   :  { %v2117_v17 = vmul.f32 1.442695, %v2108_v15 }
 0x953   :  { %v2115_v14 = vmul.f32 1.442695, %v2107_v16 }
 0x954   :  { %3671 = vpow2.f32 %v2117_v17  ;;  %v3310_v17 = vld [vmem:[%s4420_s14] ss:$0 sm:$0xff] }
 0x955   :  { %3673 = vpow2.f32 %v2115_v14  ;;  %v2104_v20 = vpop.xlane.xlu1 %2103 }
 0x956   :  { %v2110_v24 = vsub.f32 %v2082_v1, %v2104_v20  ;;  %v2101_v25 = vpop.xlane.xlu0 %2100 }
 0x957   :  { %v2109_v26 = vsub.f32 %v2006_v2, %v2101_v25 }
 0x958   :  { %v2121_v27 = vmul.f32 1.442695, %v2110_v24 }
 0x959   :  { %v2119_v23 = vmul.f32 1.442695, %v2109_v26 }
 0x95a   :  { %v3668_v30 = vpop.eup %3667  ;;  %3675 = vpow2.f32 %v2121_v27 }
 0x95b   :  { %v3670_v21 = vpop.eup %3669  ;;  %3677 = vpow2.f32 %v2119_v23  ;;  %v2126_v31 = vsel %vm2086_vm4, %v3668_v30, 0.0 }
 0x95c   :  { %2127 = vadd.xlane.f32.xlu1 %v2126_v31  ;;  %v2123_v32 = vsel %vm2086_vm4, %v3670_v21, 0.0 }
 0x95d   :  { %2124 = vadd.xlane.f32.xlu0 %v2123_v32 }
 0x95e   :  { %v3672_v35 = vpop.eup %3671 }
 0x95f   :  { %v3674_v36 = vpop.eup %3673  ;;  %v2132_v37 = vsel %vm2086_vm4, %v3672_v35, 0.0 }
 0x960   :  { %2133 = vadd.xlane.f32.xlu1 %v2132_v37  ;;  %v2129_v38 = vsel %vm2086_vm4, %v3674_v36, 0.0 }
 0x961   :  { %2130 = vadd.xlane.f32.xlu0 %v2129_v38 }
 0x964   :  { %v3676_v39 = vpop.eup %3675 }
 0x965   :  { %v3678_v40 = vpop.eup %3677  ;;  %v2138_v41 = vsel %vm2086_vm4, %v3676_v39, 0.0 }
 0x966   :  { %2139 = vadd.xlane.f32.xlu1 %v2138_v41  ;;  %v2135_v42 = vsel %vm2086_vm4, %v3678_v40, 0.0 }
 0x967   :  { %2136 = vadd.xlane.f32.xlu0 %v2135_v42 }
 0x9e9   :  { %v2128_v46 = vpop.xlane.xlu1 %2127 }
 0x9ea   :  { %3679 = vrcp.f32 %v2128_v46  ;;  %v2125_v47 = vpop.xlane.xlu0 %2124 }
 0x9eb   :  { %3681 = vrcp.f32 %v2125_v47 }
 0x9ed   :  { %v2134_v48 = vpop.xlane.xlu1 %2133 }
 0x9ee   :  { %3683 = vrcp.f32 %v2134_v48  ;;  %v2131_v49 = vpop.xlane.xlu0 %2130 }
 0x9ef   :  { %3685 = vrcp.f32 %v2131_v49 }
 0x9f3   :  { %v2140_v50 = vpop.xlane.xlu1 %2139 }
 0x9f4   :  { %v3680_v51 = vpop.eup %3679  ;;  %3687 = vrcp.f32 %v2140_v50  ;;  %v2137_v52 = vpop.xlane.xlu0 %2136 }
 0x9f5   :  { %v3682_v53 = vpop.eup %3681  ;;  %v2148_v54 = vmul.f32 %v3680_v51, %v3668_v30  ;;  %3689 = vrcp.f32 %v2137_v52 }
 0x9f6   :  { %v2147_v56 = vmul.f32 %v3682_v53, %v3670_v21 }
 0x9f7   :  { %3553 = vmatmul.mubr.msk.f32.vlgmr.msra.gmra.mrb[30].mxu0 %vm2086_vm4, %v2148_v54 }
 0x9f8   :  { %v3684_v58 = vpop.eup %3683  ;;  %3548 = vmatmul.mubr.msk.f32.vlgmr.msra.gmra.mrb[24].mxu1 %vm2086_vm4, %v2147_v56  ;;  %3561 = vmatpush3.msk.msra.mxu0 %vm2156_vm5, %v83_v55 }
 0x9f9   :  { %v3686_v59 = vpop.eup %3685  ;;  %v2150_v60 = vmul.f32 %v3684_v58, %v3672_v35  ;;  %3556 = vmatpush3.msk.msra.mxu1 %vm2156_vm5, %v82_v57  ;;  %3562 = vmatprep.mubr.msk.f32.mxu0 %vm3716_vm2, %v3715_v43 }
 0x9fa   :  { %v2149_v62 = vmul.f32 %v3686_v59, %v3674_v36  ;;  %3557 = vmatprep.mubr.msk.f32.mxu1 %vm3716_vm2, %v3715_v43  ;;  %3565 = vmatprep.subr.mxu1 %v3715_v43 }
 0x9fb   :  { %3563 = vmatmul.mubr.msk.f32.vlgmr.msra.gmra.mrb[32].mxu0 %vm2086_vm4, %v2150_v60  ;;  %3570 = vmatprep.subr.mxu0 %v3715_v43 }
 0x9fc   :  { %3558 = vmatmul.mubr.msk.f32.vlgmr.msra.gmra.mrb[26].mxu1 %vm2086_vm4, %v2149_v62  ;;  %3571 = vmatpush3.msk.msra.mxu0 %vm2156_vm5, %v85_v61 }
 0x9fd   :  { %3566 = vmatpush3.msk.msra.mxu1 %vm2156_vm5, %v84_v63  ;;  %3572 = vmatprep.mubr.msk.f32.mxu0 %vm3716_vm2, %v3715_v43 }
 0x9fe   :  { %v3688_v1 = vpop.eup %3687  ;;  %3567 = vmatprep.mubr.msk.f32.mxu1 %vm3716_vm2, %v3715_v43  ;;  %3575 = vmatprep.subr.msk.mxu1 %vm224_vm1, %v2610_v0 }
 0x9ff   :  { %v3690_v2 = vpop.eup %3689  ;;  %v2152_v3 = vmul.f32 %v3688_v1, %v3676_v39 }
 0xa00   :  { %v2151_v4 = vmul.f32 %v3690_v2, %v3678_v40 }
 0xa01   :  { %3573 = vmatmul.mubr.msk.f32.vlgmr.msra.gmra.mrb[34].mxu0 %vm2086_vm4, %v2152_v3 }
 0xa02   :  { %3568 = vmatmul.mubr.msk.f32.vlgmr.msra.gmra.mrb[28].mxu1 %vm2086_vm4, %v2151_v4 }
 0xa03   :  { %3576 = vmatpush3.msk.msra.mxu1 %vm224_vm1, %v2610_v0 }
 0xaca   :  { %v2302_v6 = vpop.f32.mrb[30].mxu0 }
 0xacb   :  { %v2226_v7 = vpop.f32.mrb[24].mxu1  ;;  %v3554_v8 = vpop.f32.mrb[31].mxu0 }
 0xacc   :  { %v3549_v9 = vpop.f32.mrb[25].mxu1  ;;  %3577 = vmatprep.mubr.msk.f32.mxu1 %vm94_vm0, %v2226_v7 }
 0xacd   :  { %3578 = vmatmul.mubr.msk.f32.vlgmr.msra.gmra.mrb[30].mxu1 %vm94_vm0, %v2302_v6  ;;  %v2850_v9 = vld [vmem:[%s4421_s17] sm:$0x3] }
 0xace   :  { %v2454_v43 = vpop.f32.mrb[32].mxu0  ;;  %3586 = vmatprep.subr.msk.mxu0 %vm224_vm1, %v2850_v9 }
 0xacf   :  { %v2378_v10 = vpop.f32.mrb[26].mxu1  ;;  %v3564_v11 = vpop.f32.mrb[33].mxu0  ;;  %3587 = vmatpush3.msk.msra.mxu0 %vm224_vm1, %v2850_v9 }
 0xad0   :  { %v3559_v12 = vpop.f32.mrb[27].mxu1  ;;  %3580 = vmatprep.mubr.msk.f32.mxu1 %vm94_vm0, %v2378_v10 }
 0xad1   :  { %3581 = vmatmul.mubr.msk.f32.gmra.mrb[32].mxu1 %vm94_vm0, %v2454_v43 }
 0xad4   :  { %v2606_v13 = vpop.f32.mrb[34].mxu0 }
 0xad5   :  { %v2530_v5 = vpop.f32.mrb[28].mxu1  ;;  %v3574_v15 = vpop.f32.mrb[35].mxu0 }
 0xad6   :  { %v3569_v19 = vpop.f32.mrb[29].mxu1  ;;  %3583 = vmatprep.mubr.msk.f32.mxu1 %vm94_vm0, %v2530_v5 }
 0xad7   :  { %3584 = vmatmul.mubr.msk.f32.gmra.mrb[34].mxu1 %vm94_vm0, %v2606_v13 }
 0xba0   :  { %v3579_v16 = vpop.f32.mrb[30].mxu1 }
 0xba1   :  { %v2728_v14 = vadd.f32 %v3579_v16, %v4096_v22  ;;  %v2698_v20 = vpop.f32.mrb[31].mxu1 }
 0xba2   :  { %v2727_v24 = vadd.f32 %v2698_v20, %v4093_v18 }
 0xba3   :  { %v2741_v25 = vadd.f32 %v3310_v17, %v2728_v14 }
 0xba4   :  { %v3582_v26 = vpop.f32.mrb[32].mxu1  ;;  %v2740_v27 = vadd.f32 %v3310_v17, %v2727_v24 }
 0xba5   :  { %v2730_v23 = vadd.f32 %v3582_v26, %v4108_v29  ;;  %v2708_v30 = vpop.f32.mrb[33].mxu1  ;;  %v2751_v21 = vsel %vm94_vm0, %v2741_v25, 0.0 }
 0xba6   :  { %v2729_v31 = vadd.f32 %v2708_v30, %v4105_v28  ;;  %2752 = vadd.xlane.f32.xlu1 %v2751_v21  ;;  %v2748_v32 = vsel %vm94_vm0, %v2740_v27, 0.0 }
 0xba7   :  { %2749 = vadd.xlane.f32.xlu0 %v2748_v32  ;;  %v2743_v35 = vadd.f32 %v3310_v17, %v2730_v23 }
 0xba8   :  { %v2742_v36 = vadd.f32 %v3310_v17, %v2729_v31  ;;  %v3311_v31 = vld [vmem:[%s4422_s15] ss:$0 sm:$0xff] }
 0xba9   :  { %v2757_v22 = vsel %vm94_vm0, %v2743_v35, 0.0 }
 0xbaa   :  { %v3585_v37 = vpop.f32.mrb[34].mxu1  ;;  %2758 = vadd.xlane.f32.xlu1 %v2757_v22  ;;  %v2754_v18 = vsel %vm94_vm0, %v2742_v36, 0.0  ;;  %v3312_v22 = vld [vmem:[%s4423_s16] ss:$0 sm:$0xff] }
 0xbab   :  { %v2732_v38 = vadd.f32 %v3585_v37, %v4119_v34  ;;  %v2718_v29 = vpop.f32.mrb[35].mxu1  ;;  %2755 = vadd.xlane.f32.xlu0 %v2754_v18 }
 0xbac   :  { %v2731_v39 = vadd.f32 %v2718_v29, %v4117_v33 }
 0xbad   :  { %v2745_v40 = vadd.f32 %v3310_v17, %v2732_v38 }
 0xbae   :  { %v2744_v28 = vadd.f32 %v3310_v17, %v2731_v39 }
 0xbaf   :  { %v2763_v41 = vsel %vm94_vm0, %v2745_v40, 0.0 }
 0xbb0   :  { %2764 = vadd.xlane.f32.xlu1 %v2763_v41  ;;  %v2760_v42 = vsel %vm94_vm0, %v2744_v28, 0.0 }
 0xbb1   :  { %2761 = vadd.xlane.f32.xlu0 %v2760_v42 }
 0xc33   :  { %v2753_v44 = vpop.xlane.xlu1 %2752 }
 0xc34   :  { %v2767_v45 = vmul.f32 0.5, %v2753_v44  ;;  %v2750_v46 = vpop.xlane.xlu0 %2749 }
 0xc35   :  { %v2766_v47 = vmul.f32 0.5, %v2750_v46 }
 0xc36   :  { %v4248_v48 = vsub.f32 %v2741_v25, %v2767_v45 }
 0xc37   :  { %v4250_v49 = vsub.f32 %v2740_v27, %v2766_v47  ;;  %v2759_v34 = vpop.xlane.xlu1 %2758 }
 0xc38   :  { %v2769_v50 = vmul.f32 0.5, %v2759_v34  ;;  %v2756_v51 = vpop.xlane.xlu0 %2755  ;;  %v2779_v33 = vmul.f32 %v4248_v48, %v4248_v48 }
 0xc39   :  { %v2768_v52 = vmul.f32 0.5, %v2756_v51  ;;  %v2778_v53 = vmul.f32 %v4250_v49, %v4250_v49 }
 0xc3a   :  { %v4256_v54 = vsub.f32 %v2743_v35, %v2769_v50  ;;  %v2787_v55 = vsel %vm94_vm0, %v2779_v33, 0.0 }
 0xc3b   :  { %v4259_v56 = vsub.f32 %v2742_v36, %v2768_v52  ;;  %2788 = vadd.xlane.f32.xlu1 %v2787_v55  ;;  %v2784_v57 = vsel %vm94_vm0, %v2778_v53, 0.0  ;;  %v3313_v53 = vld [vmem:[%s4424_s18] ss:$0 sm:$0xff] }
 0xc3c   :  { %2785 = vadd.xlane.f32.xlu0 %v2784_v57  ;;  %v2781_v58 = vmul.f32 %v4256_v54, %v4256_v54 }
 0xc3d   :  { %v2765_v59 = vpop.xlane.xlu1 %2764  ;;  %v2780_v60 = vmul.f32 %v4259_v56, %v4259_v56 }
 0xc3e   :  { %v2771_v61 = vmul.f32 0.5, %v2765_v59  ;;  %v2762_v62 = vpop.xlane.xlu0 %2761  ;;  %v2793_v63 = vsel %vm94_vm0, %v2781_v58, 0.0 }
 0xc3f   :  { %v2770_v0 = vmul.f32 0.5, %v2762_v62  ;;  %2794 = vadd.xlane.f32.xlu1 %v2793_v63  ;;  %v2790_v1 = vsel %vm94_vm0, %v2780_v60, 0.0 }
 0xc40   :  { %v2777_v2 = vsub.f32 %v2745_v40, %v2771_v61  ;;  %2791 = vadd.xlane.f32.xlu0 %v2790_v1 }
 0xc41   :  { %v2776_v3 = vsub.f32 %v2744_v28, %v2770_v0 }
 0xc42   :  { %v2783_v4 = vmul.f32 %v2777_v2, %v2777_v2 }
 0xc43   :  { %v2782_v6 = vmul.f32 %v2776_v3, %v2776_v3 }
 0xc44   :  { %v2799_v7 = vsel %vm94_vm0, %v2783_v4, 0.0 }
 0xc45   :  { %2800 = vadd.xlane.f32.xlu1 %v2799_v7  ;;  %v2796_v8 = vsel %vm94_vm0, %v2782_v6, 0.0 }
 0xc46   :  { %2797 = vadd.xlane.f32.xlu0 %v2796_v8 }
 0xcc8   :  { %v2789_v43 = vpop.xlane.xlu1 %2788 }
 0xcc9   :  { %v2803_v10 = vmul.f32 0.5, %v2789_v43  ;;  %v2786_v11 = vpop.xlane.xlu0 %2785 }
 0xcca   :  { %v2802_v12 = vmul.f32 0.5, %v2786_v11 }
 0xccb   :  { %v2809_v13 = vadd.f32 1e-05, %v2803_v10 }
 0xccc   :  { %v2808_v5 = vadd.f32 1e-05, %v2802_v12  ;;  %v2795_v15 = vpop.xlane.xlu1 %2794 }
 0xccd   :  { %3691 = vrsqrt.f32 %v2809_v13  ;;  %v2805_v19 = vmul.f32 0.5, %v2795_v15  ;;  %v2792_v16 = vpop.xlane.xlu0 %2791 }
 0xcce   :  { %3693 = vrsqrt.f32 %v2808_v5  ;;  %v2804_v17 = vmul.f32 0.5, %v2792_v16 }
 0xccf   :  { %v2811_v14 = vadd.f32 1e-05, %v2805_v19 }
 0xcd0   :  { %v2810_v20 = vadd.f32 1e-05, %v2804_v17 }
 0xcd1   :  { %3695 = vrsqrt.f32 %v2811_v14 }
 0xcd2   :  { %3697 = vrsqrt.f32 %v2810_v20  ;;  %v2801_v24 = vpop.xlane.xlu1 %2800 }
 0xcd3   :  { %v2807_v25 = vmul.f32 0.5, %v2801_v24  ;;  %v2798_v26 = vpop.xlane.xlu0 %2797 }
 0xcd4   :  { %v2806_v27 = vmul.f32 0.5, %v2798_v26 }
 0xcd5   :  { %v2813_v23 = vadd.f32 1e-05, %v2807_v25 }
 0xcd6   :  { %v2812_v30 = vadd.f32 1e-05, %v2806_v27 }
 0xcd7   :  { %v3692_v21 = vpop.eup %3691  ;;  %3699 = vrsqrt.f32 %v2813_v23 }
 0xcd8   :  { %v3694_v32 = vpop.eup %3693  ;;  %v2821_v35 = vmul.f32 %v3692_v21, %v4248_v48  ;;  %3701 = vrsqrt.f32 %v2812_v30 }
 0xcd9   :  { %v2820_v36 = vmul.f32 %v3694_v32, %v4250_v49 }
 0xcda   :  { %v2833_v37 = vmul.f32 %v3311_v31, %v2821_v35 }
 0xcdb   :  { %v3696_v18 = vpop.eup %3695  ;;  %v2832_v38 = vmul.f32 %v3311_v31, %v2820_v36 }
 0xcdc   :  { %v3698_v29 = vpop.eup %3697  ;;  %v2823_v39 = vmul.f32 %v3696_v18, %v4256_v54  ;;  %v4287_v41 = vadd.f32 %v3312_v22, %v2833_v37 }
 0xcdd   :  { %v4284_v40 = vadd.f32 %v3312_v22, %v2832_v38  ;;  %v2822_v28 = vmul.f32 %v3698_v29, %v4259_v56 }
 0xcde   :  { %v2835_v42 = vmul.f32 %v3311_v31, %v2823_v39 }
 0xcdf   :  { %3588 = vmatprep.mubr.msk.f32.mxu0 %vm94_vm0, %v4284_v40  ;;  %v2834_v44 = vmul.f32 %v3311_v31, %v2822_v28  ;;  %v3086_v28 = vld [vmem:[%s4425_s21] sm:$0xff] }
 0xce0   :  { %3589 = vmatmul.mubr.msk.f32.vlgmr.msra.gmra.mrb[36].mxu0 %vm94_vm0, %v4287_v41  ;;  %v4295_v48 = vadd.f32 %v3312_v22, %v2835_v42  ;;  %v3087_v42 = vld [vmem:[%s4425_s21 + $0x8] sm:$0x3] }
 0xce1   :  { %v3700_v45 = vpop.eup %3699  ;;  %v4293_v46 = vadd.f32 %v3312_v22, %v2834_v44  ;;  %v3610_v44 = vpack.c.bf16 %v3087_v42, %v3086_v28 }
 0xce2   :  { %v3702_v47 = vpop.eup %3701  ;;  %v2825_v49 = vmul.f32 %v3700_v45, %v2777_v2 }
 0xce3   :  { %3591 = vmatprep.mubr.msk.f32.mxu0 %vm94_vm0, %v4293_v46  ;;  %v2824_v34 = vmul.f32 %v3702_v47, %v2776_v3  ;;  %3612 = vmatprep.subr.msk.bf16.mxu1 %vm3611_vm8, %v3610_v44 }
 0xce4   :  { %3592 = vmatmul.mubr.msk.f32.gmra.mrb[38].mxu0 %vm94_vm0, %v4295_v48  ;;  %v2837_v50 = vmul.f32 %v3311_v31, %v2825_v49  ;;  %3615 = vmatpush3.bf16.msk.msra.mxu1 %vm3611_vm8, %v3610_v44 }
 0xce5   :  { %v2836_v51 = vmul.f32 %v3311_v31, %v2824_v34 }
 0xce6   :  { %v4303_v52 = vadd.f32 %v3312_v22, %v2837_v50 }
 0xce7   :  { %v4301_v33 = vadd.f32 %v3312_v22, %v2836_v51 }
 0xce9   :  { %3594 = vmatprep.mubr.msk.f32.mxu0 %vm94_vm0, %v4301_v33 }
 0xcea   :  { %3595 = vmatmul.mubr.msk.f32.gmra.mrb[40].mxu0 %vm94_vm0, %v4303_v52 }
 0xdb3   :  { %v3590_v54 = vpop.f32.mrb[36].mxu0 }
 0xdb4   :  { %v2951_v55 = vadd.f32 %v3590_v54, %v3313_v53  ;;  %v2945_v56 = vpop.f32.mrb[37].mxu0 }
 0xdb5   :  { %v2946_v57 = vadd.f32 %v3313_v53, %v2945_v56 }
 0xdb6   :  { %v2980_v58 = vsel %vm2976_vm6, %v2951_v55, 0.0 }
 0xdb7   :  { %2981 = vadd.xlane.f32.xlu1 %v2980_v58  ;;  %v3593_v59 = vpop.f32.mrb[38].mxu0  ;;  %v2977_v60 = vsel %vm2976_vm6, %v2946_v57, 0.0 }
 0xdb8   :  { %v2961_v61 = vadd.f32 %v3593_v59, %v3313_v53  ;;  %2978 = vadd.xlane.f32.xlu0 %v2977_v60  ;;  %v2955_v62 = vpop.f32.mrb[39].mxu0 }
 0xdb9   :  { %v2956_v63 = vadd.f32 %v3313_v53, %v2955_v62 }
 0xdba   :  { %v2986_v0 = vsel %vm2976_vm6, %v2961_v61, 0.0 }
 0xdbb   :  { %2987 = vadd.xlane.f32.xlu1 %v2986_v0  ;;  %v2983_v1 = vsel %vm2976_vm6, %v2956_v63, 0.0 }
 0xdbc   :  { %2984 = vadd.xlane.f32.xlu0 %v2983_v1 }
 0xdbd   :  { %v3596_v2 = vpop.f32.mrb[40].mxu0 }
 0xdbe   :  { %v2971_v3 = vadd.f32 %v3596_v2, %v3313_v53  ;;  %v2965_v4 = vpop.f32.mrb[41].mxu0  ;;  %v3321_v2 = vld [vmem:[%s4426_s19] ss:$0 sm:$0xff] }
 0xdbf   :  { %v2966_v6 = vadd.f32 %v3313_v53, %v2965_v4 }
 0xdc0   :  { %v2992_v7 = vsel %vm2976_vm6, %v2971_v3, 0.0 }
 0xdc1   :  { %2993 = vadd.xlane.f32.xlu1 %v2992_v7  ;;  %v2989_v8 = vsel %vm2976_vm6, %v2966_v6, 0.0 }
 0xdc2   :  { %2990 = vadd.xlane.f32.xlu0 %v2989_v8 }
 0xe44   :  { %v2982_v9 = vpop.xlane.xlu1 %2981 }
 0xe45   :  { %v2997_v43 = vmul.f32 0.1, %v2982_v9  ;;  %v2979_v10 = vpop.xlane.xlu0 %2978 }
 0xe46   :  { %v2996_v11 = vmul.f32 0.1, %v2979_v10 }
 0xe47   :  { %v4318_v12 = vsub.f32 %v2951_v55, %v2997_v43 }
 0xe48   :  { %v4320_v13 = vsub.f32 %v2946_v57, %v2996_v11  ;;  %v2988_v5 = vpop.xlane.xlu1 %2987 }
 0xe49   :  { %v2999_v15 = vmul.f32 0.1, %v2988_v5  ;;  %v2985_v19 = vpop.xlane.xlu0 %2984  ;;  %v3009_v16 = vmul.f32 %v4318_v12, %v4318_v12 }
 0xe4a   :  { %v2998_v17 = vmul.f32 0.1, %v2985_v19  ;;  %v3008_v14 = vmul.f32 %v4320_v13, %v4320_v13 }
 0xe4b   :  { %v4326_v20 = vsub.f32 %v2961_v61, %v2999_v15  ;;  %v3017_v24 = vsel %vm2976_vm6, %v3009_v16, 0.0 }
 0xe4c   :  { %v4329_v25 = vsub.f32 %v2956_v63, %v2998_v17  ;;  %3018 = vadd.xlane.f32.xlu1 %v3017_v24  ;;  %v3014_v26 = vsel %vm2976_vm6, %v3008_v14, 0.0 }
 0xe4d   :  { %3015 = vadd.xlane.f32.xlu0 %v3014_v26  ;;  %v3011_v27 = vmul.f32 %v4326_v20, %v4326_v20 }
 0xe4e   :  { %v2994_v23 = vpop.xlane.xlu1 %2993  ;;  %v3010_v30 = vmul.f32 %v4329_v25, %v4329_v25 }
 0xe4f   :  { %v3001_v21 = vmul.f32 0.1, %v2994_v23  ;;  %v2991_v31 = vpop.xlane.xlu0 %2990  ;;  %v3023_v32 = vsel %vm2976_vm6, %v3011_v27, 0.0 }
 0xe50   :  { %v3000_v35 = vmul.f32 0.1, %v2991_v31  ;;  %3024 = vadd.xlane.f32.xlu1 %v3023_v32  ;;  %v3020_v36 = vsel %vm2976_vm6, %v3010_v30, 0.0 }
 0xe51   :  { %v4338_v22 = vsub.f32 %v2971_v3, %v3001_v21  ;;  %3021 = vadd.xlane.f32.xlu0 %v3020_v36 }
 0xe52   :  { %v4340_v37 = vsub.f32 %v2966_v6, %v3000_v35  ;;  %v3322_v6 = vld [vmem:[%s4427_s20] ss:$0 sm:$0xff] }
 0xe53   :  { %v3013_v18 = vmul.f32 %v4338_v22, %v4338_v22 }
 0xe54   :  { %v3012_v38 = vmul.f32 %v4340_v37, %v4340_v37 }
 0xe55   :  { %v3029_v29 = vsel %vm2976_vm6, %v3013_v18, 0.0 }
 0xe56   :  { %3030 = vadd.xlane.f32.xlu1 %v3029_v29  ;;  %v3026_v39 = vsel %vm2976_vm6, %v3012_v38, 0.0 }
 0xe57   :  { %3027 = vadd.xlane.f32.xlu0 %v3026_v39 }
 0xed9   :  { %v3019_v45 = vpop.xlane.xlu1 %3018 }
 0xeda   :  { %v3033_v47 = vmul.f32 0.1, %v3019_v45  ;;  %v3016_v49 = vpop.xlane.xlu0 %3015 }
 0xedb   :  { %v3032_v34 = vmul.f32 0.1, %v3016_v49 }
 0xedc   :  { %v3039_v50 = vadd.f32 1e-05, %v3033_v47 }
 0xedd   :  { %v3038_v51 = vadd.f32 1e-05, %v3032_v34  ;;  %v3025_v53 = vpop.xlane.xlu1 %3024 }
 0xede   :  { %3703 = vrsqrt.f32 %v3039_v50  ;;  %v3035_v54 = vmul.f32 0.1, %v3025_v53  ;;  %v3022_v55 = vpop.xlane.xlu0 %3021 }
 0xedf   :  { %3705 = vrsqrt.f32 %v3038_v51  ;;  %v3034_v56 = vmul.f32 0.1, %v3022_v55 }
 0xee0   :  { %v3041_v57 = vadd.f32 1e-05, %v3035_v54 }
 0xee1   :  { %v3040_v58 = vadd.f32 1e-05, %v3034_v56 }
 0xee2   :  { %3707 = vrsqrt.f32 %v3041_v57 }
 0xee3   :  { %3709 = vrsqrt.f32 %v3040_v58  ;;  %v3031_v59 = vpop.xlane.xlu1 %3030 }
 0xee4   :  { %v3037_v60 = vmul.f32 0.1, %v3031_v59  ;;  %v3028_v61 = vpop.xlane.xlu0 %3027 }
 0xee5   :  { %v3036_v62 = vmul.f32 0.1, %v3028_v61 }
 0xee6   :  { %v3043_v63 = vadd.f32 1e-05, %v3037_v60 }
 0xee7   :  { %v3042_v0 = vadd.f32 1e-05, %v3036_v62 }
 0xee8   :  { %v3704_v1 = vpop.eup %3703  ;;  %3711 = vrsqrt.f32 %v3043_v63 }
 0xee9   :  { %v3706_v3 = vpop.eup %3705  ;;  %v3051_v4 = vmul.f32 %v3704_v1, %v4318_v12  ;;  %3713 = vrsqrt.f32 %v3042_v0 }
 0xeea   :  { %v3050_v7 = vmul.f32 %v3706_v3, %v4320_v13 }
 0xeeb   :  { %v3063_v8 = vmul.f32 %v3321_v2, %v3051_v4 }
 0xeec   :  { %v3708_v9 = vpop.eup %3707  ;;  %v3062_v43 = vmul.f32 %v3321_v2, %v3050_v7 }
 0xeed   :  { %v3710_v10 = vpop.eup %3709  ;;  %v3075_v11 = vadd.f32 %v3322_v6, %v3063_v8  ;;  %v3053_v5 = vmul.f32 %v3708_v9, %v4326_v20 }
 0xeee   :  { %v3074_v15 = vadd.f32 %v3322_v6, %v3062_v43  ;;  %v3052_v19 = vmul.f32 %v3710_v10, %v4329_v25 }
 0xeef   :  { %v3065_v16 = vmul.f32 %v3321_v2, %v3053_v5  ;;  %v3081_v14 = vmax.f32 %v3075_v11, 0.0 }
 0xef0   :  { %v3080_v17 = vmax.f32 %v3074_v15, 0.0  ;;  %v3064_v12 = vmul.f32 %v3321_v2, %v3052_v19 }
 0xef1   :  { %v3077_v24 = vadd.f32 %v3322_v6, %v3065_v16 }
 0xef2   :  { %v3712_v26 = vpop.eup %3711  ;;  %3601 = vmatprep.mubr.msk.f32.mxu1 %vm2976_vm6, %v3080_v17  ;;  %v3076_v27 = vadd.f32 %v3322_v6, %v3064_v12 }
 0xef3   :  { %v3714_v13 = vpop.eup %3713  ;;  %v3055_v23 = vmul.f32 %v3712_v26, %v4338_v22  ;;  %3602 = vmatmul.mubr.msk.f32.vlgmr.msra.gmra.mrb[36].mxu1 %vm2976_vm6, %v3081_v14  ;;  %v3083_v21 = vmax.f32 %v3077_v24, 0.0 }
 0xef4   :  { %v3054_v30 = vmul.f32 %v3714_v13, %v4340_v37  ;;  %v3082_v20 = vmax.f32 %v3076_v27, 0.0  ;;  %v3330_v37 = vld [vmem:[%s4428_s22] ss:$0 sm:$0xff] }
 0xef5   :  { %v3067_v31 = vmul.f32 %v3321_v2, %v3055_v23 }
 0xef6   :  { %3604 = vmatprep.mubr.msk.f32.mxu1 %vm2976_vm6, %v3082_v20  ;;  %v3066_v25 = vmul.f32 %v3321_v2, %v3054_v30 }
 0xef7   :  { %3605 = vmatmul.mubr.msk.f32.gmra.mrb[38].mxu1 %vm2976_vm6, %v3083_v21  ;;  %v3079_v32 = vadd.f32 %v3322_v6, %v3067_v31 }
 0xef8   :  { %v3078_v35 = vadd.f32 %v3322_v6, %v3066_v25 }
 0xef9   :  { %v3085_v18 = vmax.f32 %v3079_v32, 0.0 }
 0xefa   :  { %v3084_v36 = vmax.f32 %v3078_v35, 0.0 }
 0xefc   :  { %3607 = vmatprep.mubr.msk.f32.mxu1 %vm2976_vm6, %v3084_v36 }
 0xefd   :  { %3608 = vmatmul.mubr.msk.f32.gmra.mrb[40].mxu1 %vm2976_vm6, %v3085_v18 }
 0xfc6   :  { %v3603_v22 = vpop.f32.mrb[36].mxu1 }
 0xfc7   :  { %v3205_v38 = vadd.f32 %v3603_v22, %v4287_v41  ;;  %v3175_v29 = vpop.f32.mrb[37].mxu1 }
 0xfc8   :  { %v3204_v39 = vadd.f32 %v3175_v29, %v4284_v40 }
 0xfc9   :  { %v3218_v28 = vadd.f32 %v3330_v37, %v3205_v38 }
 0xfca   :  { %v3217_v42 = vadd.f32 %v3330_v37, %v3204_v39  ;;  %v3606_v44 = vpop.f32.mrb[38].mxu1 }
 0xfcb   :  { %3224 = vst.msk [vmem:[%s4429_s23 + $0x8] sm:$0xff] %vm94_vm0, %v3218_v28  ;;  %v3207_v45 = vadd.f32 %v3606_v44, %v4295_v48  ;;  %v3185_v47 = vpop.f32.mrb[39].mxu1 }
 0xfcc   :  { %3223 = vst.msk [vmem:[%s4429_s23] sm:$0xff] %vm94_vm0, %v3217_v42  ;;  %v3206_v41 = vadd.f32 %v3185_v47, %v4293_v46 }
 0xfcd   :  { %v3220_v49 = vadd.f32 %v3330_v37, %v3207_v45 }
 0xfce   :  { %v3219_v40 = vadd.f32 %v3330_v37, %v3206_v41 }
 0xfcf   :  { %3226 = vst.msk [vmem:[%s4429_s23 + $0x18] sm:$0xff] %vm94_vm0, %v3220_v49 }
 0xfd0   :  { %3225 = vst.msk [vmem:[%s4429_s23 + $0x10] sm:$0xff] %vm94_vm0, %v3219_v40  ;;  %v3609_v48 = vpop.f32.mrb[40].mxu1 }
 0xfd1   :  { %v3209_v34 = vadd.f32 %v3609_v48, %v4303_v52  ;;  %v3195_v50 = vpop.f32.mrb[41].mxu1 }
 0xfd2   :  { %v3208_v51 = vadd.f32 %v3195_v50, %v4301_v33 }
 0xfd3   :  { %v3222_v53 = vadd.f32 %v3330_v37, %v3209_v34 }
 0xfd4   :  { %v3221_v46 = vadd.f32 %v3330_v37, %v3208_v51 }
 0xfd5   :  { %3228 = vst.msk [vmem:[%s4429_s23 + $0x28] sm:$0xff] %vm94_vm0, %v3222_v53 }
 0xfd6   :  { %3227 = vst.msk [vmem:[%s4429_s23 + $0x20] sm:$0xff] %vm94_vm0, %v3221_v46 }

</bundles_post_ra>
